<compile_context>
chip_gen: v7x
topology: tpu7x:2x2x1
jax: 0.10.0
libtpu: 0.0.40
codegen_flags: <defaults>
</compile_context>

<pallas_src>
import functools

import jax
import jax.numpy as jnp
from jax.experimental import pallas as pl
from jax.experimental.pallas import tpu as pltpu


def _rectify_kernel(x1_ref, x2_ref, cw1_ref, cw0_ref,
                    w1a_ref, w1b_ref, b1_ref, w2_ref, b2_ref,
                    o1_ref, o2_ref, *, lambda_c, lambda_s):
    """Per-tile SpatialWeights MLP + rectification.

    x refs: (1, C, T) with channels in sublanes, pixels in lanes.
    cw1_ref / cw0_ref: (1, C, 1) pre-computed channel gates (channel_weights[1]/[0]).
    w1a/w1b: (hs, C) bf16  -- wc1 split over the [x1 | x2] channel concat.
    b1: (hs, 1) f32, w2: (2, hs) bf16, b2: (2, 1) f32.
    """
    x1 = x1_ref[0]                                   # (C, T)
    x2 = x2_ref[0]

    # ---- SpatialWeights: 1x1 convs == matmuls over the channel (sublane) dim.
    # Split over the [x1 | x2] channel concat so no big concat is materialized.
    h = (jnp.dot(w1a_ref[...], x1.astype(jnp.bfloat16),
                 preferred_element_type=jnp.float32)
         + jnp.dot(w1b_ref[...], x2.astype(jnp.bfloat16),
                   preferred_element_type=jnp.float32)
         + b1_ref[...])                              # (hs, T) f32
    h = jnp.maximum(h, 0.0).astype(jnp.bfloat16)
    z = (jnp.dot(w2_ref[...], h, preferred_element_type=jnp.float32)
         + b2_ref[...])                              # (2, T) f32
    # sigmoid via EUP exp + approximate reciprocal (keeps the divide off VALU)
    sw = pl.reciprocal(1.0 + jnp.exp(-z), approx=True)

    # ---- rectify ----------------------------------------------------------
    x1f = x1.astype(jnp.float32)
    x2f = x2.astype(jnp.float32)
    # gate for out1: lc*channel_weights[1] + ls*spatial_weights[1]
    gate1 = lambda_c * cw1_ref[0] + lambda_s * sw[1:2, :]   # (C,1)+(1,T) -> (C,T)
    # gate for out2: lc*channel_weights[0] + ls*spatial_weights[0]
    gate2 = lambda_c * cw0_ref[0] + lambda_s * sw[0:1, :]
    o1_ref[0] = (x1f + gate1 * x2f).astype(o1_ref.dtype)
    o2_ref[0] = (x2f + gate2 * x1f).astype(o2_ref.dtype)


def _pick_tile(hw):
    # Prefer big lane-dense tiles (perf review: >=512 pixels of 128 lanes);
    # fall back to the whole extent if HW isn't a multiple of 128.
    for t in (512, 256, 128):
        if hw % t == 0:
            return t
    return hw


def feature_rectify(x1, x2, params, lambda_c=0.5, lambda_s=0.5):
    """x1, x2: (B, C, H, W) NCHW. Returns (out_x1, out_x2), both NCHW."""
    B, C, H, W = x1.shape
    HW = H * W
    hs = params['wc1'].shape[0]

    # ---- ChannelWeights: global pooling + tiny MLP, hoisted out of the tile
    # loop (computed once per call, passed to the kernel as (B, C, 1) gates).
    # TODO(synk): replace with a small Pallas reduction kernel to avoid the
    # extra HBM read of x1/x2 at production sizes (HW >= 4K, C >= 256).
    avg1 = jnp.mean(x1, axis=(2, 3), dtype=jnp.float32)
    avg2 = jnp.mean(x2, axis=(2, 3), dtype=jnp.float32)
    mx1 = jnp.max(x1, axis=(2, 3)).astype(jnp.float32)
    mx2 = jnp.max(x2, axis=(2, 3)).astype(jnp.float32)
    y = jnp.concatenate([avg1, avg2, mx1, mx2], axis=-1)            # (B, 4C)
    hch = jax.nn.relu(y @ params['w1'].T + params['b1'])
    cw = jax.nn.sigmoid(hch @ params['w2'].T + params['b2'])        # (B, 2C)
    cw_x1 = cw[:, C:].reshape(B, C, 1)   # channel_weights[1] -> gates x2 in out1
    cw_x2 = cw[:, :C].reshape(B, C, 1)   # channel_weights[0] -> gates x1 in out2

    # ---- main fused kernel: SpatialWeights MLP + rectification --------------
    # Free reshapes only (no transpose / concat of the big tensors).
    x1r = x1.reshape(B, C, HW)
    x2r = x2.reshape(B, C, HW)
    # spatial-MLP weights: pre-split over [x1|x2] channels, bf16 for the MXU.
    sp_w1a = params['wc1'][:, :C].astype(jnp.bfloat16)               # (hs, C)
    sp_w1b = params['wc1'][:, C:].astype(jnp.bfloat16)               # (hs, C)
    sp_b1 = params['bc1'].reshape(hs, 1).astype(jnp.float32)
    sp_w2 = params['wc2'].astype(jnp.bfloat16)                       # (2, hs)
    sp_b2 = params['bc2'].reshape(2, 1).astype(jnp.float32)

    thw = _pick_tile(HW)
    grid = (B, HW // thw)

    kernel = functools.partial(_rectify_kernel,
                               lambda_c=lambda_c, lambda_s=lambda_s)

    out1, out2 = pl.pallas_call(
        kernel,
        out_shape=(jax.ShapeDtypeStruct((B, C, HW), x1.dtype),
                   jax.ShapeDtypeStruct((B, C, HW), x2.dtype)),
        grid_spec=pltpu.PrefetchScalarGridSpec(
            num_scalar_prefetch=0,
            grid=grid,
            in_specs=[
                pl.BlockSpec((1, C, thw), lambda b, t: (b, 0, t)),   # x1 tile
                pl.BlockSpec((1, C, thw), lambda b, t: (b, 0, t)),   # x2 tile
                pl.BlockSpec((1, C, 1), lambda b, t: (b, 0, 0)),     # cw gate -> out1
                pl.BlockSpec((1, C, 1), lambda b, t: (b, 0, 0)),     # cw gate -> out2
                pl.BlockSpec((hs, C), lambda b, t: (0, 0)),          # wc1[:, :C]
                pl.BlockSpec((hs, C), lambda b, t: (0, 0)),          # wc1[:, C:]
                pl.BlockSpec((hs, 1), lambda b, t: (0, 0)),          # bc1
                pl.BlockSpec((2, hs), lambda b, t: (0, 0)),          # wc2
                pl.BlockSpec((2, 1), lambda b, t: (0, 0)),           # bc2
            ],
            out_specs=(pl.BlockSpec((1, C, thw), lambda b, t: (b, 0, t)),
                       pl.BlockSpec((1, C, thw), lambda b, t: (b, 0, t))),
        ),
        compiler_params=pltpu.CompilerParams(
            dimension_semantics=("parallel", "parallel")),
    )(x1r, x2r, cw_x1, cw_x2, sp_w1a, sp_w1b, sp_b1, sp_w2, sp_b2)

    return out1.reshape(B, C, H, W), out2.reshape(B, C, H, W)


def init_params(key, dim, reduction=1):
    c2, c4 = 2 * dim, 4 * dim
    hc = c4 // reduction
    hs = dim // reduction
    ks = jax.random.split(key, 8)

    def w(k, shape, s=0.02):
        return jax.random.normal(k, shape, jnp.float32) * s

    return dict(
        w1=w(ks[0], (hc, c4)), b1=w(ks[1], (hc,), 0.01),
        w2=w(ks[2], (c2, hc)), b2=w(ks[3], (c2,), 0.01),
        wc1=w(ks[4], (hs, c2)), bc1=w(ks[5], (hs,), 0.01),
        wc2=w(ks[6], (2, hs)), bc2=w(ks[7], (2,), 0.01),
    )


def reference(x1, x2, p, lambda_c=0.5, lambda_s=0.5):
    """Pure-JAX mirror of the PyTorch FeatureRectifyModule.forward."""
    B, C, H, W = x1.shape
    x = jnp.concatenate([x1, x2], axis=1)                   # (B, 2C, H, W)
    # ChannelWeights
    avg = x.mean(axis=(2, 3))                               # (B, 2C)
    mx = x.max(axis=(2, 3))                                 # (B, 2C)
    y = jnp.concatenate([avg, mx], axis=-1)                 # (B, 4C)
    h = jax.nn.relu(y @ p['w1'].T + p['b1'])
    cw = jax.nn.sigmoid(h @ p['w2'].T + p['b2'])            # (B, 2C)
    cw = cw.reshape(B, 2, C, 1, 1)
    # SpatialWeights
    xf = x.transpose(0, 2, 3, 1)                            # (B, H, W, 2C)
    hs = jax.nn.relu(xf @ p['wc1'].T + p['bc1'])
    sw = jax.nn.sigmoid(hs @ p['wc2'].T + p['bc2'])         # (B, H, W, 2)
    sw = sw.transpose(0, 3, 1, 2).reshape(B, 2, 1, H, W)
    out1 = x1 + lambda_c * cw[:, 1] * x2 + lambda_s * sw[:, 1] * x2
    out2 = x2 + lambda_c * cw[:, 0] * x1 + lambda_s * sw[:, 0] * x1
    return out1, out2


if __name__ == "__main__":
    # dim=64 -> C=64 sublane-aligned, HW=1024 -> thw=512 -> grid=(2, 2)
    B, C, H, W = 2, 64, 32, 32

    key = jax.random.PRNGKey(0)
    k1, k2, kp = jax.random.split(key, 3)
    x1 = jax.random.normal(k1, (B, C, H, W), jnp.float32)
    x2 = jax.random.normal(k2, (B, C, H, W), jnp.float32)
    params = init_params(kp, C, reduction=1)

    o1, o2 = feature_rectify(x1, x2, params)
    o1, o2 = jax.block_until_ready((o1, o2))

    r1, r2 = reference(x1, x2, params)
    err = max(float(jnp.max(jnp.abs(o1 - r1))), float(jnp.max(jnp.abs(o2 - r2))))
    assert o1.shape == (B, C, H, W) and o2.shape == (B, C, H, W), (o1.shape, o2.shape)
    assert err < 1e-2, f"max abs diff vs reference too large: {err}"
    print("KERNEL_OK")
</pallas_src>

<mosaic_0001>
module attributes {stable_mosaic.version = 11 : i64} {
  func.func @_rectify_kernel(%arg0: i32, %arg1: i32, %arg2: memref<1x64x512xf32, #tpu.memory_space<vmem>>, %arg3: memref<1x64x512xf32, #tpu.memory_space<vmem>>, %arg4: memref<1x64x1xf32, #tpu.memory_space<vmem>>, %arg5: memref<1x64x1xf32, #tpu.memory_space<vmem>>, %arg6: memref<64x64xbf16, #tpu.memory_space<vmem>>, %arg7: memref<64x64xbf16, #tpu.memory_space<vmem>>, %arg8: memref<64x1xf32, #tpu.memory_space<vmem>>, %arg9: memref<2x64xbf16, #tpu.memory_space<vmem>>, %arg10: memref<2x1xf32, #tpu.memory_space<vmem>>, %arg11: memref<1x64x512xf32, #tpu.memory_space<vmem>>, %arg12: memref<1x64x512xf32, #tpu.memory_space<vmem>>) attributes {dimension_semantics = [#tpu.dimension_semantics<parallel>, #tpu.dimension_semantics<parallel>], iteration_bounds = array<i64: 2, 2>, scalar_prefetch = 0 : i64, scratch_operands = 0 : i64, tpu.core_type = #tpu.core_type<tc>, window_params = [{transform_indices = @transform_0, window_bounds = array<i64: 1, 64, 512>}, {transform_indices = @transform_1, window_bounds = array<i64: 1, 64, 512>}, {transform_indices = @transform_2, window_bounds = array<i64: 1, 64, 1>}, {transform_indices = @transform_3, window_bounds = array<i64: 1, 64, 1>}, {pipeline_mode = #tpu.pipeline_mode<synchronous>, transform_indices = @transform_4, window_bounds = array<i64: 64, 64>}, {pipeline_mode = #tpu.pipeline_mode<synchronous>, transform_indices = @transform_5, window_bounds = array<i64: 64, 64>}, {pipeline_mode = #tpu.pipeline_mode<synchronous>, transform_indices = @transform_6, window_bounds = array<i64: 64, 1>}, {pipeline_mode = #tpu.pipeline_mode<synchronous>, transform_indices = @transform_7, window_bounds = array<i64: 2, 64>}, {pipeline_mode = #tpu.pipeline_mode<synchronous>, transform_indices = @transform_8, window_bounds = array<i64: 2, 1>}, {transform_indices = @transform_9, window_bounds = array<i64: 1, 64, 512>}, {transform_indices = @transform_10, window_bounds = array<i64: 1, 64, 512>}]} {
    %c0 = arith.constant 0 : index
    %c0_0 = arith.constant 0 : index
    %c0_1 = arith.constant 0 : index
    %0 = vector.load %arg2[%c0, %c0_0, %c0_1] : memref<1x64x512xf32, #tpu.memory_space<vmem>>, vector<1x64x512xf32>
    %1 = vector.shape_cast %0 : vector<1x64x512xf32> to vector<64x512xf32>
    %c0_2 = arith.constant 0 : index
    %c0_3 = arith.constant 0 : index
    %c0_4 = arith.constant 0 : index
    %2 = vector.load %arg3[%c0_2, %c0_3, %c0_4] : memref<1x64x512xf32, #tpu.memory_space<vmem>>, vector<1x64x512xf32>
    %3 = vector.shape_cast %2 : vector<1x64x512xf32> to vector<64x512xf32>
    %c0_5 = arith.constant 0 : index
    %c0_6 = arith.constant 0 : index
    %4 = vector.load %arg6[%c0_5, %c0_6] : memref<64x64xbf16, #tpu.memory_space<vmem>>, vector<64x64xbf16>
    %5 = arith.truncf %1 : vector<64x512xf32> to vector<64x512xbf16>
    %cst = arith.constant dense<0.000000e+00> : vector<64x512xf32>
    %6 = tpu.matmul %4, %5, %cst {dimension_numbers = #tpu.dot_dimension_numbers<[1], [0], [0], [1], [0, 0, 1, 1], [], []>} : vector<64x64xbf16>, vector<64x512xbf16>, vector<64x512xf32> -> vector<64x512xf32>
    %c0_7 = arith.constant 0 : index
    %c0_8 = arith.constant 0 : index
    %7 = vector.load %arg7[%c0_7, %c0_8] : memref<64x64xbf16, #tpu.memory_space<vmem>>, vector<64x64xbf16>
    %8 = arith.truncf %3 : vector<64x512xf32> to vector<64x512xbf16>
    %cst_9 = arith.constant dense<0.000000e+00> : vector<64x512xf32>
    %9 = tpu.matmul %7, %8, %cst_9 {dimension_numbers = #tpu.dot_dimension_numbers<[1], [0], [0], [1], [0, 0, 1, 1], [], []>} : vector<64x64xbf16>, vector<64x512xbf16>, vector<64x512xf32> -> vector<64x512xf32>
    %10 = arith.addf %6, %9 : vector<64x512xf32>
    %c0_10 = arith.constant 0 : index
    %c0_11 = arith.constant 0 : index
    %11 = vector.load %arg8[%c0_10, %c0_11] : memref<64x1xf32, #tpu.memory_space<vmem>>, vector<64x1xf32>
    %12 = vector.broadcast %11 : vector<64x1xf32> to vector<64x512xf32>
    %13 = arith.addf %10, %12 : vector<64x512xf32>
    %cst_12 = arith.constant 0.000000e+00 : f32
    %14 = vector.broadcast %cst_12 : f32 to vector<64x512xf32>
    %15 = arith.maximumf %13, %14 : vector<64x512xf32>
    %16 = arith.truncf %15 : vector<64x512xf32> to vector<64x512xbf16>
    %c0_13 = arith.constant 0 : index
    %c0_14 = arith.constant 0 : index
    %17 = vector.load %arg9[%c0_13, %c0_14] : memref<2x64xbf16, #tpu.memory_space<vmem>>, vector<2x64xbf16>
    %cst_15 = arith.constant dense<0.000000e+00> : vector<2x512xf32>
    %18 = tpu.matmul %17, %16, %cst_15 {dimension_numbers = #tpu.dot_dimension_numbers<[1], [0], [0], [1], [0, 0, 1, 1], [], []>} : vector<2x64xbf16>, vector<64x512xbf16>, vector<2x512xf32> -> vector<2x512xf32>
    %c0_16 = arith.constant 0 : index
    %c0_17 = arith.constant 0 : index
    %19 = vector.load %arg10[%c0_16, %c0_17] : memref<2x1xf32, #tpu.memory_space<vmem>>, vector<2x1xf32>
    %20 = vector.broadcast %19 : vector<2x1xf32> to vector<2x512xf32>
    %21 = arith.addf %18, %20 : vector<2x512xf32>
    %cst_18 = arith.constant 0.000000e+00 : f32
    %22 = vector.broadcast %cst_18 : f32 to vector<2x512xf32>
    %23 = arith.subf %22, %21 : vector<2x512xf32>
    %24 = math.exp %23 : vector<2x512xf32>
    %cst_19 = arith.constant 1.000000e+00 : f32
    %25 = vector.broadcast %cst_19 : f32 to vector<2x512xf32>
    %26 = arith.addf %25, %24 : vector<2x512xf32>
    %27 = tpu.reciprocal %26 {approx = true} : vector<2x512xf32> -> vector<2x512xf32>
    %c0_20 = arith.constant 0 : index
    %c0_21 = arith.constant 0 : index
    %c0_22 = arith.constant 0 : index
    %28 = vector.load %arg4[%c0_20, %c0_21, %c0_22] : memref<1x64x1xf32, #tpu.memory_space<vmem>>, vector<1x64x1xf32>
    %29 = vector.shape_cast %28 : vector<1x64x1xf32> to vector<64x1xf32>
    %cst_23 = arith.constant 5.000000e-01 : f32
    %30 = vector.broadcast %cst_23 : f32 to vector<64x1xf32>
    %31 = arith.mulf %30, %29 : vector<64x1xf32>
    %32 = vector.extract_strided_slice %27 {offsets = [1, 0], sizes = [1, 512], strides = [1, 1]} : vector<2x512xf32> to vector<1x512xf32>
    %cst_24 = arith.constant 5.000000e-01 : f32
    %33 = vector.broadcast %cst_24 : f32 to vector<1x512xf32>
    %34 = arith.mulf %33, %32 : vector<1x512xf32>
    %35 = vector.broadcast %31 : vector<64x1xf32> to vector<64x512xf32>
    %36 = vector.broadcast %34 : vector<1x512xf32> to vector<64x512xf32>
    %37 = arith.addf %35, %36 : vector<64x512xf32>
    %c0_25 = arith.constant 0 : index
    %c0_26 = arith.constant 0 : index
    %c0_27 = arith.constant 0 : index
    %38 = vector.load %arg5[%c0_25, %c0_26, %c0_27] : memref<1x64x1xf32, #tpu.memory_space<vmem>>, vector<1x64x1xf32>
    %39 = vector.shape_cast %38 : vector<1x64x1xf32> to vector<64x1xf32>
    %cst_28 = arith.constant 5.000000e-01 : f32
    %40 = vector.broadcast %cst_28 : f32 to vector<64x1xf32>
    %41 = arith.mulf %40, %39 : vector<64x1xf32>
    %42 = vector.extract_strided_slice %27 {offsets = [0, 0], sizes = [1, 512], strides = [1, 1]} : vector<2x512xf32> to vector<1x512xf32>
    %cst_29 = arith.constant 5.000000e-01 : f32
    %43 = vector.broadcast %cst_29 : f32 to vector<1x512xf32>
    %44 = arith.mulf %43, %42 : vector<1x512xf32>
    %45 = vector.broadcast %41 : vector<64x1xf32> to vector<64x512xf32>
    %46 = vector.broadcast %44 : vector<1x512xf32> to vector<64x512xf32>
    %47 = arith.addf %45, %46 : vector<64x512xf32>
    %48 = arith.mulf %37, %3 : vector<64x512xf32>
    %49 = arith.addf %1, %48 : vector<64x512xf32>
    %c0_30 = arith.constant 0 : index
    %c0_31 = arith.constant 0 : index
    %c0_32 = arith.constant 0 : index
    %50 = vector.load %arg11[%c0_30, %c0_31, %c0_32] : memref<1x64x512xf32, #tpu.memory_space<vmem>>, vector<1x64x512xf32>
    %51 = vector.shape_cast %50 : vector<1x64x512xf32> to vector<64x512xf32>
    %52 = vector.shape_cast %49 : vector<64x512xf32> to vector<1x64x512xf32>
    tpu.vector_store %arg11[%c0_30, %c0_31, %c0_32], %52 {strides = array<i32>} : memref<1x64x512xf32, #tpu.memory_space<vmem>>, vector<1x64x512xf32>,
    %53 = arith.mulf %47, %1 : vector<64x512xf32>
    %54 = arith.addf %3, %53 : vector<64x512xf32>
    %c0_33 = arith.constant 0 : index
    %c0_34 = arith.constant 0 : index
    %c0_35 = arith.constant 0 : index
    %55 = vector.load %arg12[%c0_33, %c0_34, %c0_35] : memref<1x64x512xf32, #tpu.memory_space<vmem>>, vector<1x64x512xf32>
    %56 = vector.shape_cast %55 : vector<1x64x512xf32> to vector<64x512xf32>
    %57 = vector.shape_cast %54 : vector<64x512xf32> to vector<1x64x512xf32>
    tpu.vector_store %arg12[%c0_33, %c0_34, %c0_35], %57 {strides = array<i32>} : memref<1x64x512xf32, #tpu.memory_space<vmem>>, vector<1x64x512xf32>,
    return
  }
  func.func @transform_0(%arg0: i32, %arg1: i32) -> (i32, i32, i32) {
    %c0_i32 = arith.constant 0 : i32
    %c0_i32_0 = arith.constant 0 : i32
    return %arg0, %c0_i32, %arg1 : i32, i32, i32
  }
  func.func @transform_1(%arg0: i32, %arg1: i32) -> (i32, i32, i32) {
    %c0_i32 = arith.constant 0 : i32
    %c0_i32_0 = arith.constant 0 : i32
    return %arg0, %c0_i32, %arg1 : i32, i32, i32
  }
  func.func @transform_2(%arg0: i32, %arg1: i32) -> (i32, i32, i32) {
    %c0_i32 = arith.constant 0 : i32
    %c0_i32_0 = arith.constant 0 : i32
    %c0_i32_1 = arith.constant 0 : i32
    return %arg0, %c0_i32, %c0_i32_0 : i32, i32, i32
  }
  func.func @transform_3(%arg0: i32, %arg1: i32) -> (i32, i32, i32) {
    %c0_i32 = arith.constant 0 : i32
    %c0_i32_0 = arith.constant 0 : i32
    %c0_i32_1 = arith.constant 0 : i32
    return %arg0, %c0_i32, %c0_i32_0 : i32, i32, i32
  }
  func.func @transform_4(%arg0: i32, %arg1: i32) -> (i32, i32) {
    %c0_i32 = arith.constant 0 : i32
    %c0_i32_0 = arith.constant 0 : i32
    %c0_i32_1 = arith.constant 0 : i32
    return %c0_i32, %c0_i32_0 : i32, i32
  }
  func.func @transform_5(%arg0: i32, %arg1: i32) -> (i32, i32) {
    %c0_i32 = arith.constant 0 : i32
    %c0_i32_0 = arith.constant 0 : i32
    %c0_i32_1 = arith.constant 0 : i32
    return %c0_i32, %c0_i32_0 : i32, i32
  }
  func.func @transform_6(%arg0: i32, %arg1: i32) -> (i32, i32) {
    %c0_i32 = arith.constant 0 : i32
    %c0_i32_0 = arith.constant 0 : i32
    %c0_i32_1 = arith.constant 0 : i32
    return %c0_i32, %c0_i32_0 : i32, i32
  }
  func.func @transform_7(%arg0: i32, %arg1: i32) -> (i32, i32) {
    %c0_i32 = arith.constant 0 : i32
    %c0_i32_0 = arith.constant 0 : i32
    %c0_i32_1 = arith.constant 0 : i32
    return %c0_i32, %c0_i32_0 : i32, i32
  }
  func.func @transform_8(%arg0: i32, %arg1: i32) -> (i32, i32) {
    %c0_i32 = arith.constant 0 : i32
    %c0_i32_0 = arith.constant 0 : i32
    %c0_i32_1 = arith.constant 0 : i32
    return %c0_i32, %c0_i32_0 : i32, i32
  }
  func.func @transform_9(%arg0: i32, %arg1: i32) -> (i32, i32, i32) {
    %c0_i32 = arith.constant 0 : i32
    %c0_i32_0 = arith.constant 0 : i32
    return %arg0, %c0_i32, %arg1 : i32, i32, i32
  }
  func.func @transform_10(%arg0: i32, %arg1: i32) -> (i32, i32, i32) {
    %c0_i32 = arith.constant 0 : i32
    %c0_i32_0 = arith.constant 0 : i32
    return %arg0, %c0_i32, %arg1 : i32, i32, i32
  }
}

</mosaic_0001>

<bundles_post_ra>
// kernel: tpu_custom_call.1
= control target key start
LH: loop header
LB: loop body
LE: loop exit
PB: predicated region body
PF: predicated region fallthrough
CT: control target
= control target key end

     0   :  { %s3265_s0 = inlined_call_operand.hbm [shape: f32[2,64,1024], index: 0, kind: input, shape index: {}]   ;;  %s3266_s1 = inlined_call_operand.hbm [shape: f32[2,64,1024], index: 1, kind: input, shape index: {}]   ;;  %s3267_s2 = inlined_call_operand.vmem [shape: f32[2,64,1], index: 2, kind: input, shape index: {}]   ;;  %s3268_s3 = inlined_call_operand.vmem [shape: f32[2,64,1], index: 3, kind: input, shape index: {}]   ;;  %s3269_s4 = inlined_call_operand.vmem [shape: bf16[64,64], index: 4, kind: input, shape index: {}]   ;;  %s3270_s5 = inlined_call_operand.vmem [shape: bf16[64,64], index: 5, kind: input, shape index: {}]   ;;  %s3271_s6 = inlined_call_operand.vmem [shape: f32[64,1], index: 6, kind: input, shape index: {}]   ;;  %s3272_s7 = inlined_call_operand.vmem [shape: bf16[2,64], index: 7, kind: input, shape index: {}]   ;;  %s3273_s8 = inlined_call_operand.vmem [shape: f32[2,1], index: 8, kind: input, shape index: {}]   ;;  %s3274_s9 = inlined_call_operand.hbm [shape: f32[2,64,1024], index: 9, kind: output, shape index: {0}]   ;;  %s3275_s10 = inlined_call_operand.hbm [shape: f32[2,64,1024], index: 10, kind: output, shape index: {1}]  }
   0x1   :  { %3310 = sst [smem:[#allocation35_spill]] %s3265_s0 }
   0x2   :  { %3311 = sst [smem:[#allocation36_spill]] %s3275_s10 }
   0x3   :  { %16 = vsyncpa [#allocation3], 0 }
   0x4   :  { %18 = vsyncpa [#allocation3 + $0x1], 0 }
   0x5   :  { %19 = vsyncpa [#allocation6], 0 }
   0x6   :  { %21 = vsyncpa [#allocation6 + $0x1], 0 }
   0x7   :  { %22 = vsyncpa [#allocation4], 0 }
   0x8   :  { %24 = vsyncpa [#allocation4 + $0x1], 0 }
   0x9   :  { %25 = vsyncpa [#allocation9], 0 }
   0xa   :  { %27 = vsyncpa [#allocation9 + $0x1], 0  ;;  %s2339_s13 = smov 0   ;;  %s2341_s14 = smov 0  }
   0xb   :  { %s2343_s15 = smov 0   ;;  %s2345_s16 = smov 0  }
   0xc   :  { %s2347_s17 = smov 0   ;;  %s2349_s18 = smov 0  }
   0xd   :  { %s2351_s19 = smov 0   ;;  %s2353_s20 = smov 0  }
   0xe LB: > { %3312 = sst [smem:[#allocation14_spill]] %s2243_s13  ;;  %s1825_s21 = sadd.s32 4294967295, %s2271_s20   ;;  %s2271_s20 = sphi %s2353_s20, %s33_s20   ;;  %s2267_s19 = sphi %s2351_s19, %s3368_s19   ;;  %s2263_s18 = sphi %s2349_s18, %s3367_s18   ;;  %s2259_s17 = sphi %s2347_s17, %s3366_s17   ;;  %s2255_s16 = sphi %s2345_s16, %s3365_s16   ;;  %s2251_s15 = sphi %s2343_s15, %s3364_s15   ;;  %s2247_s14 = sphi %s2341_s14, %s3370_s14   ;;  %s2243_s13 = sphi %s2339_s13, %s3369_s13  }
   0xf   : > { %3313 = sst [smem:[#allocation15_spill]] %s2251_s15  ;;  %s1826_s22 = sadd.s32 4294967294, %s2271_s20  }
  0x10   : > { %3314 = sst [smem:[#allocation16_spill]] %s2263_s18  ;;  %s42_s23 = sadd.s32 1, %s2263_s18 }
  0x11   : > { %3315 = sst [smem:[#allocation17_spill]] %s2267_s19  ;;  %s45_s24 = sadd.s32 1, %s2267_s19 }
  0x12   : > { %p43_p0 = scmp.ge.s32.totalorder %s42_s23, 2  ;;  %s54_s25 = sadd.s32 1, %s2251_s15 }
  0x13   : > { %p61_p1 = scmp.ne.s32.totalorder %s2251_s15, %s2247_s14  ;;  %p62_p2 = scmp.eq.s32.totalorder %s2271_s20, 0 }
  0x14   : > { %s3372_s23 = smov (%p43_p0, %s42_s23), 0  ;;  %s3374_s24 = smov (!%p43_p0, %s45_s24), %s2267_s19 }
  0x15   : > { %3316 = sst [smem:[#allocation18_spill]] %s3372_s23  ;;  %s50_s26 = ssub.s32 %s2263_s18, %s3372_s23 }
  0x16   : > { %p2392_p3 = por %p62_p2, %p61_p1  ;;  %p47_p4 = scmp.ge.s32.totalorder %s3374_s24, 2 }
  0x17   : > { %p67_p5 = scmp.ne.s32.totalorder %s2247_s14, %s2243_s13  ;;  %p68_p6 = scmp.eq.s32.totalorder %s1825_s21, 0 }
  0x18   : > { %p278_p7 = scmp.eq.s32.totalorder %s1825_s21, 3  ;;  %s3376_s24 = smov (%p47_p4, %s3374_s24), 0 }
  0x19   : > { %3318 = sst [smem:[#allocation19_spill]] %s3376_s24  ;;  %p2400_p8 = por %p68_p6, %p67_p5 }
  0x1a   : > { %p2404_p9 = por %p278_p7, %p61_p1  ;;  %s49_s30 = ssub.s32 %s2267_s19, %s3376_s24 }
  0x1b   : > { %s3319_s28 = scalar_select %p2400_p8, 1, 0 }
  0x1c   : > { %s3320_s29 = scalar_select %p2404_p9, 1, 0 }
  0x1d   : > { %p284_p10 = scmp.eq.s32.totalorder %s1826_s22, 3  ;;  %s51_s11 = sor.u32 %s50_s26, %s49_s30 }
  0x1e   : > { %3321 = sst [smem:[#allocation20_spill]] %s3320_s29  ;;  %p52_p11 = scmp.eq.s32.totalorder %s51_s11, 0 }
  0x1f   : > { %p2410_p12 = por %p284_p10, %p67_p5  ;;  %p1938_p13 = scmp.lt.s32.totalorder %s2271_s20, 4 }
  0x20   : > { %s2416_s21 = sand.u32 1, %s2251_s15   ;;  %s1830_s10 = sshll.u32 %s2263_s18, 2 }
  0x21   : > { %s3322_s12 = scalar_select %p2410_p12, 1, 0 }
  0x22   : > { %s2419_s23 = scalar_select %p52_p11, %s2251_s15, %s54_s25  }
  0x23   : > { %3323 = sst [smem:[#allocation21_spill]] %s3322_s12  ;;  %s3281_s13 = sshll.u32 %s2416_s21, 8 }
  0x24   : > { %3324 = sst [smem:[#allocation22_spill]] %s2419_s23  ;;  %s1831_s24 = sshll.u32 %s2267_s19, 6 }
  0x25   : > { %s351_s22 = scalar_lea.vmem [#allocation2], %s3281_s13  ;;  %s2426_s30 = sadd.s32 %s1831_s24, %s1830_s10 }
  0x26   : > { %s360_s26 = sshll.u32 %s351_s22, 4  ;;  %s3282_s11 = sshll.u32 %s2426_s30, 7  ;;  %s2428_s26 = int_to_ptr.vmem [resolvable:$true] %s360_s26 }
  0x27   : > { %p2433_p0 = pnand %p1938_p13, %p2392_p3  ;;  %s3326_s0 = sld [smem:[#allocation35_spill]] }
  0x29   : > { %p2079_p3 = pneg %p2433_p0 }
  0x2d   : > { %s2442_s13 = scalar_lea.hbm %s3326_s0, %s3282_s11  ;;  %s2082_s22 = scalar_lea.hbm %s3326_s0, 16384 }
  0x2e   : > { %s2077_s24 = scalar_lea.hbm %s2442_s13, 4096  ;;  %p2083_p6 = scmp.lt.u32.totalorder %s2442_s13, %s3326_s0 }
  0x2f   : > { %p2078_p2 = scmp.ne.s32.totalorder %s2442_s13, %s2077_s24  ;;  %p2084_p7 = scmp.lt.u32.totalorder %s2082_s22, %s2077_s24 }
  0x30   : > { %p2086_p11 = scmp.lt.u32.totalorder %s2077_s24, %s2442_s13 }
  0x31   : > { %p2080_p4 = pnand %p2079_p3, %p2078_p2  ;;  %p2085_p10 = por %p2084_p7, %p2083_p6 }
  0x33   : > { %p2081_p5 = pneg %p2080_p4  ;;  %p2087_p13 = por %p2086_p11, %p2085_p10 }
  0x35   : > { %p2088_p1 = pnand %p2087_p13, %p2081_p5 }
  0x37   : > { %2091 = shalt.err (!%p2088_p1)
}
  0x38   : > { %s2092_s10 = scalar_lea.vmem %s2428_s26, 4096  ;;  %s2273_s27 = smov [#allocation2]  }
  0x39   : > { %p2093_p2 = scmp.ne.s32.totalorder %s2428_s26, %s2092_s10  ;;  %s2097_s23 = sshll.u32 %s2273_s27, 4  ;;  %s2098_s23 = int_to_ptr.vmem [resolvable:$false] %s2097_s23 }
  0x3a   : > { %s2099_s11 = scalar_lea.vmem %s2098_s23, 8192  ;;  %p2100_p9 = scmp.lt.s32.totalorder %s2428_s26, %s2098_s23 }
  0x3b   : > { %p2095_p4 = pnand %p2093_p2, %p2079_p3  ;;  %p2101_p6 = scmp.lt.s32.totalorder %s2099_s11, %s2092_s10 }
  0x3d   : > { %p2096_p12 = pneg %p2095_p4  ;;  %p2102_p7 = por %p2101_p6, %p2100_p9 }
  0x3f   : > { %p2103_p10 = pnand %p2102_p7, %p2096_p12 }
  0x41   : > { %2106 = shalt.err (!%p2103_p10)
}
  0x42   : > { %s2274_s24 = smov 1024   ;;  %s2275_s22 = smov 512  }
  0x43   : > { %s2276_s25 = smov 32   ;;  %s3327_s10 = scalar_lea.sflag [#allocation3], %s2416_s21 }
  0x44   : > { %1927 = dma.hbm_to_vmem [thread:$0]  (!%p2433_p0), %s2442_s13, 4096, %s2428_s26, %s3327_s10, %s2274_s24, %s2275_s22, %s2276_s25  }
  0x45   : > { %p407_p9 = scmp.lt.s32.totalorder %s2271_s20, 5  ;;  %s3328_s27 = sshll.u32 %s2426_s30, 7 }
  0x46   : > { %s2482_s0 = scalar_lea.hbm %s3266_s1, %s3328_s27  ;;  %p3329_p12 = scmp.ge.s32.totalorder %s2271_s20, 1 }
  0x47   : > { %s3331_s18 = sshll.u32 %s2416_s21, 8  ;;  %s371_s13 = scalar_lea.sflag [#allocation6], %s2416_s21 }
  0x48   : > { %p2486_p1 = pnand %p3329_p12, %p407_p9  ;;  %s374_s15 = scalar_lea.vmem [#allocation5], %s3331_s18 }
  0x49   : > { %s383_s29 = sshll.u32 %s374_s15, 4  ;;  %s2107_s26 = scalar_lea.hbm %s2482_s0, 4096  ;;  %s2492_s29 = int_to_ptr.vmem [resolvable:$true] %s383_s29 }
  0x4a   : > { %p2108_p5 = scmp.ne.s32.totalorder %s2482_s0, %s2107_s26  ;;  %s2112_s27 = scalar_lea.hbm %s3266_s1, 16384 }
  0x4b   : > { %p2113_p2 = scmp.lt.u32.totalorder %s2482_s0, %s3266_s1  ;;  %p2114_p4 = scmp.lt.u32.totalorder %s2112_s27, %s2107_s26 }
  0x4c   : > { %p2110_p11 = pnand %p2108_p5, %p2079_p3  ;;  %p2116_p7 = scmp.lt.u32.totalorder %s2107_s26, %s2482_s0 }
  0x4d   : > { %p2115_p6 = por %p2114_p4, %p2113_p2 }
  0x4e   : > { %p2111_p13 = pneg %p2110_p11 }
  0x4f   : > { %p2117_p10 = por %p2116_p7, %p2115_p6 }
  0x51   : > { %p2118_p9 = pnand %p2117_p10, %p2111_p13 }
  0x53   : > { %2121 = shalt.err (!%p2118_p9)
}
  0x54   : > { %s2122_s15 = scalar_lea.vmem %s2492_s29, 4096  ;;  %s2277_s18 = smov [#allocation5]  }
  0x55   : > { %p2123_p12 = scmp.ne.s32.totalorder %s2492_s29, %s2122_s15  ;;  %s2127_s30 = sshll.u32 %s2277_s18, 4  ;;  %s2128_s30 = int_to_ptr.vmem [resolvable:$false] %s2127_s30 }
  0x56   : > { %s2129_s10 = scalar_lea.vmem %s2128_s30, 8192  ;;  %p2130_p8 = scmp.lt.s32.totalorder %s2492_s29, %s2128_s30 }
  0x57   : > { %p2125_p5 = pnand %p2123_p12, %p2079_p3  ;;  %p2131_p2 = scmp.lt.s32.totalorder %s2129_s10, %s2122_s15 }
  0x59   : > { %p2126_p11 = pneg %p2125_p5  ;;  %p2132_p4 = por %p2131_p2, %p2130_p8 }
  0x5b   : > { %p2133_p6 = pnand %p2132_p4, %p2126_p11 }
  0x5d   : > { %2136 = shalt.err (!%p2133_p6)
}
  0x5e   : > { %1930 = dma.hbm_to_vmem [thread:$0]  (!%p2433_p0), %s2482_s0, 4096, %s2492_s29, %s371_s13, %s2274_s24, %s2275_s22, %s2276_s25  }
  0x5f   : > { %411 = sbr.rel (%p2486_p1) target bundleno = 751 (0x2ef), region = 56 }
  0x66   : > { %s2526_s26 = sand.u32 1, %s2247_s14   ;;  %p3332_p8 = scmp.ne.s32.totalorder %s3319_s28, 0 }
  0x67   : > { %s2529_s27 = sshll.u32 %s2526_s26, 8  ;;  %s414_s12 = scalar_lea.sflag [#allocation3], %s2526_s26 }
  0x68   : > { %s2533_s23 = scalar_lea.vmem [#allocation2], %s2529_s27 }
  0x69   : > { %2226 = dma.done.wait (%p3332_p8), %s414_s12, 4096  }
  0x6a   : > { %2228 = vsyncadd (%p3332_p8), %s414_s12, 4294963200  ;;  %s423_s0 = scalar_lea.sflag [#allocation6], %s2526_s26  ;;  %s2541_s19 = scalar_lea.vmem [#allocation5], %s2529_s27 }
  0x6b   : > { %2230 = dma.done.wait (%p3332_p8), %s423_s0, 4096  }
  0x6c   : > { %2232 = vsyncadd (%p3332_p8), %s423_s0, 4294963200  ;;  %v2278_v0 = vmov 0   ;;  %v531_v1 = vld [vmem:[%s2541_s19 + $0x8] sm:$0xff]  ;;  %v533_v3 = vld [vmem:[%s2541_s19 + $0x18] sm:$0xff]  ;;  %vm630_vm0 = vcmask 523264   ;;  %p485_p0 = scmp.lt.s32.totalorder %s2259_s17, 1 }
  0x6d   : > { %675 = vmatprep.mubr.bf16.mxu0 %v2278_v0  ;;  %748 = vmatprep.mubr.bf16.mxu1 %v2278_v0  ;;  %v535_v2 = vld [vmem:[%s2541_s19 + $0x28] sm:$0xff]  ;;  %v537_v5 = vld [vmem:[%s2541_s19 + $0x38] sm:$0xff]  ;;  %v2556_v6 = vld [vmem:[%s2541_s19] sm:$0xff]  ;;  %s2903_s24 = scalar_lea.vmem [#allocation7], %s2529_s27  ;;  %s2930_s22 = scalar_lea.vmem [#allocation8], %s2529_s27 }
  0x6e   : > { %2011 = vset.pattern.permute.xlu0 %v2278_v0  ;;  %2012 = vset.pattern.permute.xlu1 %v2278_v0  ;;  %v595_v4 = vpack.c.bf16 %v535_v2, %v531_v1  ;;  %v2559_v7 = vld [vmem:[%s2541_s19 + $0x20] sm:$0xff]  ;;  %v597_v8 = vpack.c.bf16 %v537_v5, %v533_v3  ;;  %v532_v10 = vld [vmem:[%s2541_s19 + $0x10] sm:$0xff]  ;;  %v539_v12 = vld [vmem:[%s2541_s19 + $0x48] sm:$0xff]  ;;  %s2730_s28 = scalar_select %p485_p0, %s2259_s17, 1 }
  0x6f   : > { %v594_v9 = vpack.c.bf16 %v2559_v7, %v2556_v6  ;;  %v536_v11 = vld [vmem:[%s2541_s19 + $0x30] sm:$0xff]  ;;  %v543_v14 = vld [vmem:[%s2541_s19 + $0x68] sm:$0xff]  ;;  %v541_v15 = vld [vmem:[%s2541_s19 + $0x58] sm:$0xff]  ;;  %s1874_s27 = sshll.u32 %s2255_s16, 2  ;;  %s1875_s13 = sshll.u32 %s2259_s17, 6 }
  0x70   : > { %643 = vmatprep.subr.bf16.mxu0 %v595_v4  ;;  %v596_v13 = vpack.c.bf16 %v536_v11, %v532_v10  ;;  %v545_v16 = vld [vmem:[%s2541_s19 + $0x78] sm:$0xff]  ;;  %716 = vmatprep.subr.bf16.mxu1 %v597_v8  ;;  %v599_v17 = vpack.c.bf16 %v543_v14, %v539_v12  ;;  %v2570_v19 = vld [vmem:[%s2541_s19 + $0x40] sm:$0xff]  ;;  %v540_v21 = vld [vmem:[%s2541_s19 + $0x50] sm:$0xff]  ;;  %s1882_s25 = sshll.u32 %s2730_s28, 6  ;;  %s3070_s16 = sadd.s32 %s1875_s13, %s1874_s27 }
  0x71   : > { %644 = vmatpush1.bf16.msra.mxu0 %v594_v9  ;;  %v601_v18 = vpack.c.bf16 %v545_v16, %v541_v15  ;;  %v2573_v20 = vld [vmem:[%s2541_s19 + $0x60] sm:$0xff]  ;;  %v544_v23 = vld [vmem:[%s2541_s19 + $0x70] sm:$0xff]  ;;  %v547_v24 = vld [vmem:[%s2541_s19 + $0x88] sm:$0xff]  ;;  %s2754_s12 = scalar_lea.vmem %s3267_s2, %s1882_s25  ;;  %s2789_s10 = scalar_lea.vmem %s3268_s3, %s1882_s25 }
  0x72   : > { %717 = vmatpush1.bf16.msra.mxu1 %v596_v13  ;;  %v598_v22 = vpack.c.bf16 %v2573_v20, %v2570_v19  ;;  %v551_v25 = vld [vmem:[%s2541_s19 + $0xa8] sm:$0xff]  ;;  %645 = vmatprep.subr.bf16.mxu0 %v599_v17  ;;  %v600_v26 = vpack.c.bf16 %v544_v23, %v540_v21  ;;  %v549_v28 = vld [vmem:[%s2541_s19 + $0x98] sm:$0xff]  ;;  %v2584_v30 = vld [vmem:[%s2541_s19 + $0x80] sm:$0xff]  ;;  %s1876_s17 = sshll.u32 %s3070_s16, 7  ;;  %s1632_s11 = sshll.u32 %s2903_s24, 4  ;;  %s3145_s11 = int_to_ptr.vmem [resolvable:$true] %s1632_s11 }
  0x73   : > { %718 = vmatprep.subr.bf16.mxu1 %v601_v18  ;;  %v603_v27 = vpack.c.bf16 %v551_v25, %v547_v24  ;;  %v553_v29 = vld [vmem:[%s2541_s19 + $0xb8] sm:$0xff]  ;;  %v2587_v32 = vld [vmem:[%s2541_s19 + $0xa0] sm:$0xff]  ;;  %v548_v33 = vld [vmem:[%s2541_s19 + $0x90] sm:$0xff]  ;;  %s3139_s30 = scalar_lea.hbm %s3274_s9, %s1876_s17  ;;  %s2137_s28 = scalar_lea.vmem %s3145_s11, 4096 }
  0x74   : > { %v605_v31 = vpack.c.bf16 %v553_v29, %v549_v28  ;;  %v552_v34 = vld [vmem:[%s2541_s19 + $0xb0] sm:$0xff]  ;;  %v602_v35 = vpack.c.bf16 %v2587_v32, %v2584_v30  ;;  %v555_v36 = vld [vmem:[%s2541_s19 + $0xc8] sm:$0xff]  ;;  %v557_v38 = vld [vmem:[%s2541_s19 + $0xd8] sm:$0xff]  ;;  %p2138_p3 = scmp.ne.s32.totalorder %s3145_s11, %s2137_s28  ;;  %s2279_s25 = smov [#allocation7]  }
  0x75   : > { %646 = vmatpush1.bf16.msra.mxu0 %v598_v22  ;;  %v559_v37 = vld [vmem:[%s2541_s19 + $0xe8] sm:$0xff]  ;;  %v604_v39 = vpack.c.bf16 %v552_v34, %v548_v33  ;;  %v561_v41 = vld [vmem:[%s2541_s19 + $0xf8] sm:$0xff]  ;;  %v2598_v42 = vld [vmem:[%s2541_s19 + $0xc0] sm:$0xff] }
  0x76   : > { %719 = vmatpush1.bf16.msra.mxu1 %v600_v26  ;;  %647 = vmatprep.subr.bf16.mxu0 %v603_v27  ;;  %v607_v40 = vpack.c.bf16 %v559_v37, %v555_v36  ;;  %v2601_v43 = vld [vmem:[%s2541_s19 + $0xe0] sm:$0xff]  ;;  %v609_v44 = vpack.c.bf16 %v561_v41, %v557_v38  ;;  %v2604_v45 = vld [vmem:[%s2541_s19 + $0xd0] sm:$0xff]  ;;  %v499_v47 = vld [vmem:[%s2533_s23 + $0x8] sm:$0xff] }
  0x77   : > { %720 = vmatprep.subr.bf16.mxu1 %v605_v31  ;;  %v2607_v46 = vld [vmem:[%s2541_s19 + $0xf0] sm:$0xff]  ;;  %v606_v48 = vpack.c.bf16 %v2601_v43, %v2598_v42  ;;  %v503_v49 = vld [vmem:[%s2533_s23 + $0x28] sm:$0xff]  ;;  %v501_v50 = vld [vmem:[%s2533_s23 + $0x18] sm:$0xff] }
  0x78   : > { %v505_v51 = vld [vmem:[%s2533_s23 + $0x38] sm:$0xff]  ;;  %v608_v52 = vpack.c.bf16 %v2607_v46, %v2604_v45  ;;  %v571_v53 = vpack.c.bf16 %v503_v49, %v499_v47  ;;  %v2618_v54 = vld [vmem:[%s2533_s23] sm:$0xff]  ;;  %v2624_v56 = vld [vmem:[%s2533_s23 + $0x10] sm:$0xff] }
  0x79   : > { %648 = vmatpush1.bf16.msra.mxu0 %v602_v35  ;;  %v2621_v55 = vld [vmem:[%s2533_s23 + $0x20] sm:$0xff]  ;;  %v573_v57 = vpack.c.bf16 %v505_v51, %v501_v50  ;;  %v2627_v58 = vld [vmem:[%s2533_s23 + $0x30] sm:$0xff]  ;;  %v507_v60 = vld [vmem:[%s2533_s23 + $0x48] sm:$0xff] }
  0x7a   : > { %721 = vmatpush1.bf16.msra.mxu1 %v604_v39  ;;  %649 = vmatprep.subr.bf16.mxu0 %v607_v40  ;;  %v2013_v59 = vld [vmem:[%s3270_s5] sm:$0xff]   ;;  %v511_v61 = vld [vmem:[%s2533_s23 + $0x68] sm:$0xff]  ;;  %v570_v62 = vpack.c.bf16 %v2621_v55, %v2618_v54  ;;  %v509_v63 = vld [vmem:[%s2533_s23 + $0x58] sm:$0xff]  ;;  %v572_v2 = vpack.c.bf16 %v2627_v58, %v2624_v56 }
  0x7b   : > { %722 = vmatprep.subr.bf16.mxu1 %v609_v44  ;;  %v513_v1 = vld [vmem:[%s2533_s23 + $0x78] sm:$0xff]  ;;  %v2641_v3 = vld [vmem:[%s2533_s23 + $0x40] sm:$0xff]  ;;  %v2647_v5 = vld [vmem:[%s2533_s23 + $0x50] sm:$0xff]  ;;  %v575_v8 = vpack.c.bf16 %v511_v61, %v507_v60 }
  0x7c   : > { %v2644_v4 = vld [vmem:[%s2533_s23 + $0x60] sm:$0xff]  ;;  %3333 = vst [vmem:[#allocation23_spill] sm:$0xff] %v2647_v5  ;;  %v2650_v9 = vld [vmem:[%s2533_s23 + $0x70] sm:$0xff]  ;;  %v577_v10 = vpack.c.bf16 %v513_v1, %v509_v63  ;;  %v515_v11 = vld [vmem:[%s2533_s23 + $0x88] sm:$0xff] }
  0x7d   : > { %650 = vmatpush1.bf16.msra.mxu0 %v606_v48  ;;  %3334 = vst [vmem:[#allocation24_spill] sm:$0xff] %v2650_v9  ;;  %v519_v12 = vld [vmem:[%s2533_s23 + $0xa8] sm:$0xff]  ;;  %v517_v13 = vld [vmem:[%s2533_s23 + $0x98] sm:$0xff]  ;;  %v574_v14 = vpack.c.bf16 %v2644_v4, %v2641_v3  ;;  %v576_v17 = vpack.c.bf16 %v2650_v9, %v2647_v5  ;;  %v2667_v21 = vld [vmem:[%s2533_s23 + $0x80] sm:$0xff] }
  0x7e   : > { %723 = vmatpush1.bf16.msra.mxu1 %v608_v52  ;;  %821 = vmatprep.subr.bf16.mxu0 %v571_v53  ;;  %v521_v15 = vld [vmem:[%s2533_s23 + $0xb8] sm:$0xff]  ;;  %v2014_v16 = vld [vmem:[%s3270_s5 + $0x8] sm:$0xff]   ;;  %v579_v18 = vpack.c.bf16 %v519_v12, %v515_v11  ;;  %v2671_v23 = vld [vmem:[%s2533_s23 + $0xa0] sm:$0xff] }
  0x7f   : > { %894 = vmatprep.subr.bf16.mxu1 %v573_v57  ;;  %v581_v22 = vpack.c.bf16 %v521_v15, %v517_v13  ;;  %v2674_v24 = vld [vmem:[%s2533_s23 + $0x90] sm:$0xff]  ;;  %v2680_v26 = vld [vmem:[%s2533_s23 + $0xc8] sm:$0xff]  ;;  %v525_v28 = vld [vmem:[%s2533_s23 + $0xd8] sm:$0xff]  ;;  %v578_v33 = vpack.c.bf16 %v2671_v23, %v2667_v21 }
  0x80   : > { %1850 = vmatmul.mubr.msk.bf16.vlgmr.msra.gmra.mrb[0].mxu0 %vm630_vm0, %v2013_v59  ;;  %3335 = vst [vmem:[#allocation25_spill] sm:$0xff] %v2674_v24  ;;  %v2677_v25 = vld [vmem:[%s2533_s23 + $0xb0] sm:$0xff]  ;;  %3337 = vst [vmem:[#allocation27_spill] sm:$0xff] %v2680_v26  ;;  %v2683_v27 = vld [vmem:[%s2533_s23 + $0xe8] sm:$0xff] }
  0x81   : > { %1854 = vmatmul.mubr.msk.bf16.vlgmr.msra.gmra.mrb[0].mxu1 %vm630_vm0, %v2013_v59  ;;  %822 = vmatpush1.bf16.msra.mxu0 %v570_v62  ;;  %3336 = vst [vmem:[#allocation26_spill] sm:$0xff] %v2677_v25  ;;  %3338 = vst [vmem:[#allocation28_spill] sm:$0xff] %v2683_v27  ;;  %v529_v29 = vld [vmem:[%s2533_s23 + $0xf8] sm:$0xff]  ;;  %v2688_v31 = vld [vmem:[%s2533_s23 + $0xc0] sm:$0xff]  ;;  %v580_v35 = vpack.c.bf16 %v2677_v25, %v2674_v24  ;;  %v583_v36 = vpack.c.bf16 %v2683_v27, %v2680_v26 }
  0x82   : > { %895 = vmatpush1.bf16.msra.mxu1 %v572_v2  ;;  %685 = vmatprep.mubr.bf16.mxu0 %v2278_v0  ;;  %v2693_v34 = vld [vmem:[%s2533_s23 + $0xe0] sm:$0xff]  ;;  %v2700_v37 = vld [vmem:[%s2533_s23 + $0xd0] sm:$0xff]  ;;  %v585_v38 = vpack.c.bf16 %v529_v29, %v525_v28  ;;  %v968_v49 = vld [vmem:[%s3271_s6 + $0x8] sm:$0xff] }
  0x83   : > { %758 = vmatprep.mubr.bf16.mxu1 %v2278_v0  ;;  %823 = vmatprep.subr.bf16.mxu0 %v575_v8  ;;  %3339 = vst [vmem:[#allocation29_spill] sm:$0xff] %v2700_v37  ;;  %v2704_v39 = vld [vmem:[%s2533_s23 + $0xf0] sm:$0xff]  ;;  %v582_v40 = vpack.c.bf16 %v2693_v34, %v2688_v31  ;;  %v967_v41 = vld [vmem:[%s3271_s6] sm:$0xff]  ;;  %v970_v50 = vld [vmem:[%s3271_s6 + $0x18] sm:$0xff] }
  0x84   : > { %896 = vmatprep.subr.bf16.mxu1 %v577_v10  ;;  %3340 = vst [vmem:[#allocation30_spill] sm:$0xff] %v2704_v39  ;;  %v584_v44 = vpack.c.bf16 %v2704_v39, %v2700_v37  ;;  %v969_v47 = vld [vmem:[%s3271_s6 + $0x10] sm:$0xff]  ;;  %977 = vperm.xlu0 %2011, %v967_v41   ;;  %v971_v51 = vld [vmem:[%s3271_s6 + $0x20] sm:$0xff]  ;;  %v972_v52 = vld [vmem:[%s3271_s6 + $0x28] sm:$0xff] }
  0x85   : > { %824 = vmatpush1.bf16.msra.mxu0 %v574_v14  ;;  %v2015_v48 = vld [vmem:[%s3270_s5 + $0x10] sm:$0xff]   ;;  %987 = vperm.xlu1 %2012, %v969_v47   ;;  %v2016_v53 = vld [vmem:[%s3270_s5 + $0x18] sm:$0xff]   ;;  %v1207_v60 = vld [vmem:[%s2754_s12] sm:$0xff] }
  0x86   : > { %897 = vmatpush1.bf16.msra.mxu1 %v576_v17  ;;  %825 = vmatprep.subr.bf16.mxu0 %v579_v18  ;;  %v973_v57 = vld [vmem:[%s3271_s6 + $0x30] sm:$0xff]  ;;  %v974_v59 = vld [vmem:[%s3271_s6 + $0x38] sm:$0xff]  ;;  %v1096_v61 = vld [vmem:[%s3273_s8] sm:$0x3]  ;;  %v1215_v63 = vmul.f32 0.5, %v1207_v60 }
  0x87   : > { %898 = vmatprep.subr.bf16.mxu1 %v581_v22  ;;  %v1208_v62 = vld [vmem:[%s2754_s12 + $0x8] sm:$0xff]  ;;  %v1209_v1 = vld [vmem:[%s2754_s12 + $0x10] sm:$0xff]  ;;  %v2017_v2 = vld [vmem:[%s3269_s4] sm:$0xff]  }
  0x88   : > { %1851 = vmatmul.mubr.msk.bf16.gmra.mrb[4].mxu0 %vm630_vm0, %v2014_v16  ;;  %982 = vperm.xlu0 %2011, %v968_v49   ;;  %v1216_v8 = vmul.f32 0.5, %v1208_v62  ;;  %v1210_v10 = vld [vmem:[%s2754_s12 + $0x18] sm:$0xff]  ;;  %v1217_v11 = vmul.f32 0.5, %v1209_v1  ;;  %v1211_v12 = vld [vmem:[%s2754_s12 + $0x20] sm:$0xff]  ;;  %v1212_v14 = vld [vmem:[%s2754_s12 + $0x28] sm:$0xff] }
  0x89   : > { %1855 = vmatmul.mubr.msk.bf16.gmra.mrb[4].mxu1 %vm630_vm0, %v2014_v16  ;;  %695 = vmatprep.mubr.bf16.mxu0 %v2278_v0  ;;  %v1218_v13 = vmul.f32 0.5, %v1210_v10  ;;  %v1219_v15 = vmul.f32 0.5, %v1211_v12  ;;  %v1213_v16 = vld [vmem:[%s2754_s12 + $0x30] sm:$0xff]  ;;  %v2018_v17 = vld [vmem:[%s3269_s4 + $0x8] sm:$0xff]   ;;  %v1220_v18 = vmul.f32 0.5, %v1212_v14  ;;  %v1214_v22 = vld [vmem:[%s2754_s12 + $0x38] sm:$0xff] }
  0x8a   : > { %768 = vmatprep.mubr.bf16.mxu1 %v2278_v0  ;;  %826 = vmatpush1.bf16.msra.mxu0 %v578_v33  ;;  %v1221_v28 = vmul.f32 0.5, %v1213_v16  ;;  %v1315_v29 = vld [vmem:[%s2789_s10] sm:$0xff]  ;;  %v1222_v33 = vmul.f32 0.5, %v1214_v22  ;;  %s2141_s12 = sshll.u32 %s2279_s25, 4  ;;  %s2142_s12 = int_to_ptr.vmem [resolvable:$false] %s2141_s12 }
  0x8b   : > { %899 = vmatpush1.bf16.msra.mxu1 %v580_v35  ;;  %827 = vmatprep.subr.bf16.mxu0 %v583_v36  ;;  %v1316_v35 = vld [vmem:[%s2789_s10 + $0x8] sm:$0xff]  ;;  %v1323_v36 = vmul.f32 0.5, %v1315_v29  ;;  %s2143_s0 = scalar_lea.vmem %s2142_s12, 8192  ;;  %p2144_p10 = scmp.lt.s32.totalorder %s3145_s11, %s2142_s12 }
  0x8c   : > { %900 = vmatprep.subr.bf16.mxu1 %v585_v38  ;;  %992 = vperm.xlu1 %2012, %v970_v50   ;;  %v1317_v38 = vld [vmem:[%s2789_s10 + $0x10] sm:$0xff]  ;;  %v1324_v41 = vmul.f32 0.5, %v1316_v35  ;;  %v1320_v50 = vld [vmem:[%s2789_s10 + $0x28] sm:$0xff]  ;;  %p2145_p9 = scmp.lt.s32.totalorder %s2143_s0, %s2137_s28 }
  0x8d   : > { %997 = vperm.xlu0 %2011, %v971_v51   ;;  %v1325_v47 = vmul.f32 0.5, %v1317_v38 }
  0x8e   : > { %828 = vmatpush1.bf16.msra.mxu0 %v582_v40  ;;  %v2019_v40 = vld [vmem:[%s3269_s4 + $0x10] sm:$0xff]   ;;  %p2146_p12 = por %p2145_p9, %p2144_p10 }
  0x8f   : > { %901 = vmatpush1.bf16.msra.mxu1 %v584_v44  ;;  %v1318_v44 = vld [vmem:[%s2789_s10 + $0x18] sm:$0xff] }
  0x90   : > { %1852 = vmatmul.mubr.msk.bf16.gmra.mrb[8].mxu0 %vm630_vm0, %v2015_v48  ;;  %1002 = vperm.xlu1 %2012, %v972_v52   ;;  %v1326_v49 = vmul.f32 0.5, %v1318_v44  ;;  %v1321_v52 = vld [vmem:[%s2789_s10 + $0x30] sm:$0xff] }
  0x91   : > { %1856 = vmatmul.mubr.msk.bf16.gmra.mrb[8].mxu1 %vm630_vm0, %v2015_v48  ;;  %705 = vmatprep.mubr.bf16.mxu0 %v2278_v0  ;;  %v1319_v48 = vld [vmem:[%s2789_s10 + $0x20] sm:$0xff]  ;;  %v1329_v60 = vmul.f32 0.5, %v1321_v52 }
  0x92   : > { %778 = vmatprep.mubr.bf16.mxu1 %v2278_v0  ;;  %1007 = vperm.xlu0 %2011, %v973_v57   ;;  %v1327_v51 = vmul.f32 0.5, %v1319_v48  ;;  %v1328_v57 = vmul.f32 0.5, %v1320_v50 }
  0x94   : > { %1012 = vperm.xlu1 %2012, %v974_v59   ;;  %v1322_v59 = vld [vmem:[%s2789_s10 + $0x38] sm:$0xff]  ;;  %s3357_s10 = sld [smem:[#allocation20_spill]] }
  0x96   : > { %1099 = vperm.xlu0 %2011, %v1096_v61   ;;  %v1330_v61 = vmul.f32 0.5, %v1322_v59 }
  0x98   : > { %1853 = vmatmul.mubr.msk.bf16.gmra.mrb[12].mxu0 %vm630_vm0, %v2016_v53  ;;  %1229 = vperm.xlu1 %2012, %v1215_v63  }
  0x99   : > { %1857 = vmatmul.mubr.msk.bf16.gmra.mrb[12].mxu1 %vm630_vm0, %v2016_v53  ;;  %853 = vmatprep.mubr.bf16.mxu0 %v2278_v0  ;;  %v2020_v53 = vld [vmem:[%s3269_s4 + $0x18] sm:$0xff]  }
  0x9a   : > { %926 = vmatprep.mubr.bf16.mxu1 %v2278_v0  ;;  %1234 = vperm.xlu0 %2011, %v1216_v8   ;;  %p3358_p1 = scmp.ne.s32.totalorder %s3357_s10, 0 }
  0x9c   : > { %1239 = vperm.xlu1 %2012, %v1217_v11   ;;  %p2139_p13 = pnand %p2138_p3, %p3358_p1 }
  0x9e   : > { %1244 = vperm.xlu0 %2011, %v1218_v13   ;;  %p2140_p7 = pneg %p2139_p13 }
  0xa0   : > { %1862 = vmatmul.mubr.msk.bf16.vlgmr.msra.gmra.mrb[0].mxu0 %vm630_vm0, %v2017_v2  ;;  %1249 = vperm.xlu1 %2012, %v1219_v15   ;;  %p2147_p5 = pnand %p2146_p12, %p2140_p7 }
  0xa1   : > { %1866 = vmatmul.mubr.msk.bf16.vlgmr.msra.gmra.mrb[0].mxu1 %vm630_vm0, %v2017_v2  ;;  %863 = vmatprep.mubr.bf16.mxu0 %v2278_v0 }
  0xa2   : > { %936 = vmatprep.mubr.bf16.mxu1 %v2278_v0  ;;  %1254 = vperm.xlu0 %2011, %v1220_v18  }
  0xa4   : > { %1259 = vperm.xlu1 %2012, %v1221_v28  }
  0xa6   : > { %1264 = vperm.xlu0 %2011, %v1222_v33  }
  0xa8   : > { %1863 = vmatmul.mubr.msk.bf16.gmra.mrb[4].mxu0 %vm630_vm0, %v2018_v17  ;;  %1333 = vperm.xlu1 %2012, %v1323_v36  }
  0xa9   : > { %1867 = vmatmul.mubr.msk.bf16.gmra.mrb[4].mxu1 %vm630_vm0, %v2018_v17  ;;  %873 = vmatprep.mubr.bf16.mxu0 %v2278_v0 }
  0xaa   : > { %946 = vmatprep.mubr.bf16.mxu1 %v2278_v0  ;;  %1338 = vperm.xlu0 %2011, %v1324_v41  }
  0xac   : > { %1343 = vperm.xlu1 %2012, %v1325_v47  }
  0xae   : > { %1348 = vperm.xlu0 %2011, %v1326_v49  }
  0xb0   : > { %1864 = vmatmul.mubr.msk.bf16.gmra.mrb[8].mxu0 %vm630_vm0, %v2019_v40  ;;  %1353 = vperm.xlu1 %2012, %v1327_v51  }
  0xb1   : > { %1868 = vmatmul.mubr.msk.bf16.gmra.mrb[8].mxu1 %vm630_vm0, %v2019_v40  ;;  %883 = vmatprep.mubr.bf16.mxu0 %v2278_v0 }
  0xb2   : > { %956 = vmatprep.mubr.bf16.mxu1 %v2278_v0  ;;  %1358 = vperm.xlu0 %2011, %v1328_v57  }
  0xb4   : > { %1363 = vperm.xlu1 %2012, %v1329_v60  }
  0xb6   : > { %1368 = vperm.xlu0 %2011, %v1330_v61  }
  0xb8   : > { %1865 = vmatmul.mubr.msk.bf16.gmra.mrb[12].mxu0 %vm630_vm0, %v2020_v53 }
  0xb9   : > { %1869 = vmatmul.mubr.msk.bf16.gmra.mrb[12].mxu1 %vm630_vm0, %v2020_v53  ;;  %1137 = vmatprep.mubr.bf16.mxu0 %v2278_v0 }
  0xba   : > { %1178 = vmatprep.mubr.bf16.mxu1 %v2278_v0 }
 0x103   : > { %v978_v62 = vpop.permute.xlu0 %977 }
 0x104   : > { %v988_v63 = vpop.permute.xlu1 %987 }
 0x107   : > { %v983_v1 = vpop.permute.xlu0 %982 }
 0x10b   : > { %v993_v50 = vpop.permute.xlu1 %992 }
 0x173   : > { %v855_v2 = vpop.f32.mrb[0].mxu0 }
 0x174   : > { %v1015_v8 = vadd.f32 %v978_v62, %v855_v2  ;;  %v928_v10 = vpop.f32.mrb[0].mxu1  ;;  %v857_v11 = vpop.f32.mrb[1].mxu0 }
 0x175   : > { %v1017_v12 = vadd.f32 %v978_v62, %v928_v10  ;;  %v1016_v13 = vadd.f32 %v978_v62, %v857_v11  ;;  %v930_v14 = vpop.f32.mrb[1].mxu1  ;;  %v859_v15 = vpop.f32.mrb[2].mxu0 }
 0x176   : > { %v1018_v16 = vadd.f32 %v978_v62, %v930_v14  ;;  %v1019_v17 = vadd.f32 %v983_v1, %v859_v15  ;;  %v932_v18 = vpop.f32.mrb[2].mxu1  ;;  %v861_v22 = vpop.f32.mrb[3].mxu0  ;;  %v1047_v0 = vmax.f32 %v1015_v8, 0.0 }
 0x177   : > { %v1021_v28 = vadd.f32 %v983_v1, %v932_v18  ;;  %v1020_v29 = vadd.f32 %v983_v1, %v861_v22  ;;  %v934_v33 = vpop.f32.mrb[3].mxu1  ;;  %v1049_v38 = vmax.f32 %v1017_v12, 0.0  ;;  %v1048_v40 = vmax.f32 %v1016_v13, 0.0 }
 0x178   : > { %v1051_v35 = vmax.f32 %v1019_v17, 0.0  ;;  %v1022_v36 = vadd.f32 %v983_v1, %v934_v33  ;;  %v1050_v47 = vmax.f32 %v1018_v16, 0.0 }
 0x179   : > { %v1053_v41 = vmax.f32 %v1021_v28, 0.0  ;;  %v1052_v44 = vmax.f32 %v1020_v29, 0.0 }
 0x17a   : > { %v1079_v48 = vpack.c.bf16 %v1051_v35, %v1047_v0  ;;  %v1054_v49 = vmax.f32 %v1022_v36, 0.0  ;;  %v998_v35 = vpop.permute.xlu0 %997 }
 0x17b   : > { %v1081_v51 = vpack.c.bf16 %v1053_v41, %v1049_v38  ;;  %v1080_v52 = vpack.c.bf16 %v1052_v44, %v1048_v40  ;;  %v865_v53 = vpop.f32.mrb[4].mxu0  ;;  %v1003_v40 = vpop.permute.xlu1 %1002 }
 0x17c   : > { %v1082_v57 = vpack.c.bf16 %v1054_v49, %v1050_v47  ;;  %v1023_v59 = vadd.f32 %v988_v63, %v865_v53  ;;  %v938_v60 = vpop.f32.mrb[4].mxu1  ;;  %v867_v61 = vpop.f32.mrb[5].mxu0 }
 0x17d   : > { %v1025_v62 = vadd.f32 %v988_v63, %v938_v60  ;;  %v1024_v2 = vadd.f32 %v988_v63, %v867_v61  ;;  %v940_v8 = vpop.f32.mrb[5].mxu1  ;;  %v869_v10 = vpop.f32.mrb[6].mxu0  ;;  %1105 = vmatprep.subr.bf16.mxu0 %v1080_v52 }
 0x17e   : > { %v1026_v1 = vadd.f32 %v988_v63, %v940_v8  ;;  %v1027_v11 = vadd.f32 %v993_v50, %v869_v10  ;;  %v942_v12 = vpop.f32.mrb[6].mxu1  ;;  %1146 = vmatprep.subr.bf16.mxu1 %v1082_v57  ;;  %v871_v13 = vpop.f32.mrb[7].mxu0  ;;  %1106 = vmatpush1.bf16.msra.mxu0 %v1079_v48  ;;  %v1055_v17 = vmax.f32 %v1023_v59, 0.0 }
 0x17f   : > { %v1029_v14 = vadd.f32 %v993_v50, %v942_v12  ;;  %v1028_v15 = vadd.f32 %v993_v50, %v871_v13  ;;  %v944_v16 = vpop.f32.mrb[7].mxu1  ;;  %1147 = vmatpush1.bf16.msra.mxu1 %v1081_v51  ;;  %v1057_v28 = vmax.f32 %v1025_v62, 0.0  ;;  %v1056_v29 = vmax.f32 %v1024_v2, 0.0 }
 0x180   : > { %v1059_v18 = vmax.f32 %v1027_v11, 0.0  ;;  %v1030_v22 = vadd.f32 %v993_v50, %v944_v16  ;;  %v1058_v36 = vmax.f32 %v1026_v1, 0.0 }
 0x181   : > { %v1061_v33 = vmax.f32 %v1029_v14, 0.0  ;;  %v1060_v0 = vmax.f32 %v1028_v15, 0.0 }
 0x182   : > { %v1083_v38 = vpack.c.bf16 %v1059_v18, %v1055_v17  ;;  %v1062_v63 = vmax.f32 %v1030_v22, 0.0  ;;  %v1008_v18 = vpop.permute.xlu0 %1007 }
 0x183   : > { %v1085_v41 = vpack.c.bf16 %v1061_v33, %v1057_v28  ;;  %v1084_v44 = vpack.c.bf16 %v1060_v0, %v1056_v29  ;;  %v875_v47 = vpop.f32.mrb[8].mxu0  ;;  %v1013_v33 = vpop.permute.xlu1 %1012 }
 0x184   : > { %v1086_v48 = vpack.c.bf16 %v1062_v63, %v1058_v36  ;;  %v1031_v49 = vadd.f32 %v998_v35, %v875_v47  ;;  %v948_v52 = vpop.f32.mrb[8].mxu1  ;;  %v877_v53 = vpop.f32.mrb[9].mxu0 }
 0x185   : > { %v1033_v51 = vadd.f32 %v998_v35, %v948_v52  ;;  %v1032_v57 = vadd.f32 %v998_v35, %v877_v53  ;;  %v950_v59 = vpop.f32.mrb[9].mxu1  ;;  %v879_v50 = vpop.f32.mrb[10].mxu0  ;;  %1107 = vmatprep.subr.bf16.mxu0 %v1084_v44 }
 0x186   : > { %v1034_v60 = vadd.f32 %v998_v35, %v950_v59  ;;  %v1035_v61 = vadd.f32 %v1003_v40, %v879_v50  ;;  %v952_v62 = vpop.f32.mrb[10].mxu1  ;;  %1148 = vmatprep.subr.bf16.mxu1 %v1086_v48  ;;  %v881_v2 = vpop.f32.mrb[11].mxu0  ;;  %1108 = vmatpush1.bf16.msra.mxu0 %v1083_v38  ;;  %v1063_v11 = vmax.f32 %v1031_v49, 0.0 }
 0x187   : > { %v1037_v8 = vadd.f32 %v1003_v40, %v952_v62  ;;  %v1036_v10 = vadd.f32 %v1003_v40, %v881_v2  ;;  %v954_v1 = vpop.f32.mrb[11].mxu1  ;;  %1149 = vmatpush1.bf16.msra.mxu1 %v1085_v41  ;;  %v1065_v14 = vmax.f32 %v1033_v51, 0.0  ;;  %v1064_v15 = vmax.f32 %v1032_v57, 0.0 }
 0x188   : > { %v1067_v12 = vmax.f32 %v1035_v61, 0.0  ;;  %v1038_v13 = vadd.f32 %v1003_v40, %v954_v1  ;;  %v1066_v22 = vmax.f32 %v1034_v60, 0.0 }
 0x189   : > { %v1069_v16 = vmax.f32 %v1037_v8, 0.0  ;;  %v1068_v17 = vmax.f32 %v1036_v10, 0.0 }
 0x18a   : > { %v1087_v28 = vpack.c.bf16 %v1067_v12, %v1063_v11  ;;  %v1070_v29 = vmax.f32 %v1038_v13, 0.0 }
 0x18b   : > { %v1089_v0 = vpack.c.bf16 %v1069_v16, %v1065_v14  ;;  %v1088_v35 = vpack.c.bf16 %v1068_v17, %v1064_v15  ;;  %v885_v36 = vpop.f32.mrb[12].mxu0 }
 0x18c   : > { %v1090_v38 = vpack.c.bf16 %v1070_v29, %v1066_v22  ;;  %v1039_v63 = vadd.f32 %v1008_v18, %v885_v36  ;;  %v958_v44 = vpop.f32.mrb[12].mxu1  ;;  %v887_v47 = vpop.f32.mrb[13].mxu0 }
 0x18d   : > { %v1041_v41 = vadd.f32 %v1008_v18, %v958_v44  ;;  %v1040_v48 = vadd.f32 %v1008_v18, %v887_v47  ;;  %v960_v49 = vpop.f32.mrb[13].mxu1  ;;  %v889_v40 = vpop.f32.mrb[14].mxu0  ;;  %1109 = vmatprep.subr.bf16.mxu0 %v1088_v35 }
 0x18e   : > { %v1042_v52 = vadd.f32 %v1008_v18, %v960_v49  ;;  %v1043_v53 = vadd.f32 %v1013_v33, %v889_v40  ;;  %v962_v51 = vpop.f32.mrb[14].mxu1  ;;  %1150 = vmatprep.subr.bf16.mxu1 %v1090_v38  ;;  %v891_v57 = vpop.f32.mrb[15].mxu0  ;;  %1110 = vmatpush1.bf16.msra.mxu0 %v1087_v28  ;;  %v1071_v61 = vmax.f32 %v1039_v63, 0.0  ;;  %v1095_v18 = vld [vmem:[%s3272_s7] sm:$0x1] }
 0x18f   : > { %v1045_v59 = vadd.f32 %v1013_v33, %v962_v51  ;;  %v1044_v50 = vadd.f32 %v1013_v33, %v891_v57  ;;  %v964_v60 = vpop.f32.mrb[15].mxu1  ;;  %1151 = vmatpush1.bf16.msra.mxu1 %v1089_v0  ;;  %v1073_v8 = vmax.f32 %v1041_v41, 0.0  ;;  %v1072_v10 = vmax.f32 %v1040_v48, 0.0  ;;  %v1100_v22 = vpop.permute.xlu0 %1099 }
 0x190   : > { %v1075_v62 = vmax.f32 %v1043_v53, 0.0  ;;  %v1046_v2 = vadd.f32 %v1013_v33, %v964_v60  ;;  %v1074_v12 = vmax.f32 %v1042_v52, 0.0  ;;  %v2822_v28 = vpop.permute.xlu1 %1229 }
 0x191   : > { %v1077_v1 = vmax.f32 %v1045_v59, 0.0  ;;  %v1076_v11 = vmax.f32 %v1044_v50, 0.0 }
 0x192   : > { %v1091_v13 = vpack.c.bf16 %v1075_v62, %v1071_v61  ;;  %v1078_v14 = vmax.f32 %v1046_v2, 0.0 }
 0x193   : > { %v1093_v15 = vpack.c.bf16 %v1077_v1, %v1073_v8  ;;  %v1092_v16 = vpack.c.bf16 %v1076_v11, %v1072_v10  ;;  %v2824_v29 = vpop.permute.xlu0 %1234 }
 0x194   : > { %v1094_v17 = vpack.c.bf16 %v1078_v14, %v1074_v12  ;;  %v2826_v33 = vpop.permute.xlu1 %1239 }
 0x195   : > { %1111 = vmatprep.subr.bf16.mxu0 %v1092_v16 }
 0x196   : > { %1152 = vmatprep.subr.bf16.mxu1 %v1094_v17  ;;  %1112 = vmatpush1.bf16.msra.mxu0 %v1091_v13 }
 0x197   : > { %1153 = vmatpush1.bf16.msra.mxu1 %v1093_v15  ;;  %v2828_v0 = vpop.permute.xlu0 %1244 }
 0x198   : > { %v2832_v8 = vpop.permute.xlu1 %1249 }
 0x199   : > { %1870 = vmatmul.mubr.msk.bf16.vlgmr.msra.gmra.mrb[16].mxu0 %vm630_vm0, %v1095_v18 }
 0x19a   : > { %1871 = vmatmul.mubr.msk.bf16.vlgmr.msra.gmra.mrb[16].mxu1 %vm630_vm0, %v1095_v18 }
 0x19b   : > { %v2830_v2 = vpop.permute.xlu0 %1254 }
 0x19c   : > { %v2836_v11 = vpop.permute.xlu1 %1259 }
 0x19f   : > { %v2834_v1 = vpop.permute.xlu0 %1264 }
 0x1a0   : > { %v2840_v17 = vpop.permute.xlu1 %1333 }
 0x1a3   : > { %v2838_v16 = vpop.permute.xlu0 %1338 }
 0x26c   : > { %v1139_v35 = vpop.f32.mrb[16].mxu0 }
 0x26d   : > { %v1140_v36 = vadd.f32 %v1139_v35, %v1100_v22  ;;  %v1180_v38 = vpop.f32.mrb[16].mxu1  ;;  %v1141_v63 = vpop.f32.mrb[17].mxu0 }
 0x26e   : > { %v1181_v44 = vadd.f32 %v1180_v38, %v1100_v22  ;;  %v1142_v47 = vadd.f32 %v1141_v63, %v1100_v22  ;;  %v1182_v41 = vpop.f32.mrb[17].mxu1  ;;  %v1143_v48 = vpop.f32.mrb[18].mxu0 }
 0x26f   : > { %v1187_v49 = vsub.f32 0.0, %v1140_v36  ;;  %v1183_v40 = vadd.f32 %v1182_v41, %v1100_v22  ;;  %v1184_v52 = vpop.f32.mrb[18].mxu1  ;;  %v1144_v53 = vpop.f32.mrb[19].mxu0  ;;  %v1267_v36 = vlaneseq }
 0x270   : > { %v1189_v51 = vsub.f32 0.0, %v1181_v44  ;;  %v1188_v57 = vsub.f32 0.0, %v1142_v47  ;;  %v1185_v59 = vpop.f32.mrb[19].mxu1  ;;  %v2842_v63 = vpop.permute.xlu0 %1348 }
 0x271   : > { %v1191_v50 = vmul.f32 1.442695, %v1187_v49  ;;  %v1190_v60 = vsub.f32 0.0, %v1183_v40  ;;  %v2844_v44 = vpop.permute.xlu1 %1343  ;;  %v1268_v47 = vshrl.u32 %v1267_v36, 7 }
 0x272   : > { %v1195_v61 = vmul.f32 1.442695, %v1189_v51  ;;  %v1193_v62 = vmul.f32 1.442695, %v1188_v57 }
 0x273   : > { %2021 = vpow2.f32 %v1191_v50  ;;  %v1197_v10 = vmul.f32 1.442695, %v1190_v60  ;;  %v2846_v41 = vsub.s32 1, %v1268_v47  ;;  %v2848_v48 = vsub.s32 0, %v1268_v47 }
 0x274   : > { %2023 = vpow2.f32 %v1195_v61  ;;  %v2850_v52 = vpop.permute.xlu0 %1358 }
 0x275   : > { %2025 = vpow2.f32 %v1193_v62  ;;  %3341 = vst [vmem:[#allocation31_spill] sm:$0xff] %v2846_v41  ;;  %3342 = vst [vmem:[#allocation32_spill] sm:$0xff] %v2848_v48  ;;  %v2852_v53 = vpop.permute.xlu1 %1353 }
 0x276   : > { %2027 = vpow2.f32 %v1197_v10 }
 0x27d   : > { %v2022_v12 = vpop.eup %2021 }
 0x27e   : > { %v2024_v13 = vpop.eup %2023  ;;  %v1199_v14 = vadd.f32 1.0, %v2022_v12 }
 0x27f   : > { %v2026_v15 = vpop.eup %2025  ;;  %v1201_v18 = vadd.f32 1.0, %v2024_v13 }
 0x280   : > { %v2028_v22 = vpop.eup %2027  ;;  %2029 = vrcp.f32 %v1199_v14  ;;  %v1200_v35 = vadd.f32 1.0, %v2026_v15 }
 0x281   : > { %2031 = vrcp.f32 %v1201_v18  ;;  %v1202_v38 = vadd.f32 1.0, %v2028_v22 }
 0x282   : > { %2033 = vrcp.f32 %v1200_v35 }
 0x283   : > { %2035 = vrcp.f32 %v1202_v38 }
 0x28a   : > { %v2030_v49 = vpop.eup %2029 }
 0x28b   : > { %v2032_v40 = vpop.eup %2031  ;;  %v1223_v51 = vmul.f32 0.5, %v2030_v49  ;;  %v2874_v49 = vpop.permute.xlu0 %1368 }
 0x28c   : > { %v2034_v57 = vpop.eup %2033  ;;  %v1225_v59 = vmul.f32 0.5, %v2032_v40  ;;  %v2876_v40 = vpop.permute.xlu1 %1363 }
 0x28d   : > { %v2036_v50 = vpop.eup %2035  ;;  %v1270_v60 = vrot.slane %v1223_v51, %v2846_v41  ;;  %v1374_v61 = vrot.slane %v1223_v51, %v2848_v48  ;;  %v2862_v12 = vmul.f32 0.5, %v2034_v57 }
 0x28e   : > { %v2857_v62 = vrot.slane %v1225_v59, %v2846_v41  ;;  %v2860_v10 = vrot.slane %v1225_v59, %v2848_v48  ;;  %v2864_v13 = vmul.f32 0.5, %v2036_v50 }
 0x28f   : > { %3343 = vst [vmem:[#allocation33_spill] sm:$0xff] %v2862_v12  ;;  %v1283_v14 = vadd.f32 %v1270_v60, %v2822_v28  ;;  %v1287_v15 = vadd.f32 %v1270_v60, %v2824_v29  ;;  %v1291_v18 = vadd.f32 %v1270_v60, %v2826_v33  ;;  %v1295_v22 = vadd.f32 %v1270_v60, %v2828_v0 }
 0x290   : > { %3344 = vst [vmem:[#allocation34_spill] sm:$0xff] %v2864_v13  ;;  %v1299_v35 = vadd.f32 %v1270_v60, %v2832_v8  ;;  %v1303_v36 = vadd.f32 %v1270_v60, %v2830_v2  ;;  %v1307_v38 = vadd.f32 %v1270_v60, %v2836_v11  ;;  %v1311_v47 = vadd.f32 %v1270_v60, %v2834_v1 }
 0x291   : > { %v1387_v51 = vadd.f32 %v1374_v61, %v2840_v17  ;;  %v1391_v57 = vadd.f32 %v1374_v61, %v2838_v16  ;;  %v1395_v59 = vadd.f32 %v1374_v61, %v2844_v44  ;;  %v1399_v50 = vadd.f32 %v1374_v61, %v2842_v63 }
 0x292   : > { %v1403_v27 = vadd.f32 %v1374_v61, %v2852_v53  ;;  %v1407_v26 = vadd.f32 %v1374_v61, %v2850_v52  ;;  %v1411_v13 = vadd.f32 %v1374_v61, %v2876_v40  ;;  %v1415_v60 = vadd.f32 %v1374_v61, %v2874_v49 }
 0x293   : > { %v1419_v48 = vmul.f32 %v1283_v14, %v2556_v6  ;;  %v1423_v12 = vmul.f32 %v1287_v15, %v2559_v7  ;;  %v1427_v41 = vmul.f32 %v1291_v18, %v2570_v19  ;;  %v1431_v39 = vmul.f32 %v1295_v22, %v2573_v20 }
 0x294   : > { %v1435_v37 = vmul.f32 %v1299_v35, %v2584_v30  ;;  %v1439_v25 = vmul.f32 %v1303_v36, %v2587_v32  ;;  %v1443_v24 = vmul.f32 %v1307_v38, %v2598_v42  ;;  %v1447_v9 = vmul.f32 %v1311_v47, %v2601_v43 }
 0x295   : > { %v1451_v5 = vadd.f32 %v1419_v48, %v2618_v54  ;;  %v1455_v61 = vadd.f32 %v1423_v12, %v2621_v55  ;;  %v1459_v14 = vadd.f32 %v1427_v41, %v2641_v3  ;;  %v1463_v15 = vadd.f32 %v1431_v39, %v2644_v4 }
 0x296   : > { %v1467_v18 = vadd.f32 %v1435_v37, %v2667_v21  ;;  %v1471_v22 = vadd.f32 %v1439_v25, %v2671_v23  ;;  %v1475_v35 = vadd.f32 %v1443_v24, %v2688_v31  ;;  %v1479_v36 = vadd.f32 %v1447_v9, %v2693_v34 }
 0x297   : > { %1483 = vst [vmem:[%s2903_s24] sm:$0xff] %v1451_v5  ;;  %1487 = vst [vmem:[%s2903_s24 + $0x20] sm:$0xff] %v1455_v61  ;;  %v1515_v25 = vmul.f32 %v1387_v51, %v2618_v54  ;;  %v1519_v24 = vmul.f32 %v1391_v57, %v2621_v55  ;;  %v1523_v9 = vmul.f32 %v1395_v59, %v2641_v3  ;;  %v2037_v57 = vld [vmem:[%s2541_s19 + $0x10] sm:$0xff] }
 0x298   : > { %1491 = vst [vmem:[%s2903_s24 + $0x40] sm:$0xff] %v1459_v14  ;;  %1495 = vst [vmem:[%s2903_s24 + $0x60] sm:$0xff] %v1463_v15  ;;  %v1527_v37 = vmul.f32 %v1399_v50, %v2644_v4  ;;  %v1531_v39 = vmul.f32 %v1403_v27, %v2667_v21  ;;  %v1535_v5 = vmul.f32 %v1407_v26, %v2671_v23  ;;  %v2038_v50 = vld [vmem:[%s2541_s19 + $0x30] sm:$0xff] }
 0x299   : > { %1499 = vst [vmem:[%s2903_s24 + $0x80] sm:$0xff] %v1467_v18  ;;  %1503 = vst [vmem:[%s2903_s24 + $0xa0] sm:$0xff] %v1471_v22  ;;  %v1539_v41 = vmul.f32 %v1411_v13, %v2688_v31  ;;  %v1543_v48 = vmul.f32 %v1415_v60, %v2693_v34  ;;  %v1547_v54 = vadd.f32 %v1515_v25, %v2556_v6  ;;  %v2039_v61 = vld [vmem:[%s2541_s19 + $0x50] sm:$0xff] }
 0x29a   : > { %1507 = vst [vmem:[%s2903_s24 + $0xc0] sm:$0xff] %v1475_v35  ;;  %1511 = vst [vmem:[%s2903_s24 + $0xe0] sm:$0xff] %v1479_v36  ;;  %v1551_v55 = vadd.f32 %v1519_v24, %v2559_v7  ;;  %v1555_v3 = vadd.f32 %v1523_v9, %v2570_v19  ;;  %v1559_v4 = vadd.f32 %v1527_v37, %v2573_v20  ;;  %v2040_v15 = vld [vmem:[%s2541_s19 + $0x70] sm:$0xff] }
 0x29b   : > { %v1563_v12 = vadd.f32 %v1531_v39, %v2584_v30  ;;  %v1567_v38 = vadd.f32 %v1535_v5, %v2587_v32  ;;  %v1571_v21 = vadd.f32 %v1539_v41, %v2598_v42  ;;  %v1575_v23 = vadd.f32 %v1543_v48, %v2601_v43  ;;  %1579 = vst [vmem:[%s2930_s22] sm:$0xff] %v1547_v54  ;;  %v2041_v22 = vld [vmem:[%s2541_s19 + $0x90] sm:$0xff]  ;;  %v3345_v39 = vld [vmem:[#allocation23_spill] sm:$0xff]  ;;  %v3346_v41 = vld [vmem:[#allocation24_spill] sm:$0xff] }
 0x29c   : > { %1583 = vst [vmem:[%s2930_s22 + $0x20] sm:$0xff] %v1551_v55  ;;  %1587 = vst [vmem:[%s2930_s22 + $0x40] sm:$0xff] %v1555_v3  ;;  %v1285_v6 = vadd.f32 %v2857_v62, %v2822_v28  ;;  %v1289_v7 = vadd.f32 %v2857_v62, %v2824_v29  ;;  %v1293_v19 = vadd.f32 %v2857_v62, %v2826_v33  ;;  %v2042_v36 = vld [vmem:[%s2541_s19 + $0xb0] sm:$0xff]  ;;  %v3348_v3 = vld [vmem:[#allocation26_spill] sm:$0xff] }
 0x29d   : > { %1591 = vst [vmem:[%s2930_s22 + $0x60] sm:$0xff] %v1559_v4  ;;  %v1297_v20 = vadd.f32 %v2857_v62, %v2828_v0  ;;  %1595 = vst [vmem:[%s2930_s22 + $0x80] sm:$0xff] %v1563_v12  ;;  %v1301_v30 = vadd.f32 %v2857_v62, %v2832_v8  ;;  %v1305_v32 = vadd.f32 %v2857_v62, %v2830_v2  ;;  %v3347_v54 = vld [vmem:[#allocation25_spill] sm:$0xff] }
 0x29e   : > { %1599 = vst [vmem:[%s2930_s22 + $0xa0] sm:$0xff] %v1567_v38  ;;  %1603 = vst [vmem:[%s2930_s22 + $0xc0] sm:$0xff] %v1571_v21  ;;  %v1309_v42 = vadd.f32 %v2857_v62, %v2836_v11  ;;  %v1313_v43 = vadd.f32 %v2857_v62, %v2834_v1  ;;  %v1389_v26 = vadd.f32 %v2860_v10, %v2840_v17  ;;  %v3349_v12 = vld [vmem:[#allocation29_spill] sm:$0xff]  ;;  %v3350_v38 = vld [vmem:[#allocation30_spill] sm:$0xff] }
 0x29f   : > { %1607 = vst [vmem:[%s2930_s22 + $0xe0] sm:$0xff] %v1575_v23  ;;  %v1393_v27 = vadd.f32 %v2860_v10, %v2838_v16  ;;  %v1397_v31 = vadd.f32 %v2860_v10, %v2844_v44  ;;  %v1401_v34 = vadd.f32 %v2860_v10, %v2842_v63  ;;  %v1405_v13 = vadd.f32 %v2860_v10, %v2852_v53 }
 0x2a0   : > { %v1409_v62 = vadd.f32 %v2860_v10, %v2850_v52  ;;  %v1413_v47 = vadd.f32 %v2860_v10, %v2876_v40  ;;  %v1417_v51 = vadd.f32 %v2860_v10, %v2874_v49  ;;  %v1421_v59 = vmul.f32 %v2037_v57, %v1285_v6 }
 0x2a1   : > { %v1425_v60 = vmul.f32 %v2038_v50, %v1289_v7  ;;  %v1429_v14 = vmul.f32 %v2039_v61, %v1293_v19  ;;  %v1433_v18 = vmul.f32 %v2040_v15, %v1297_v20  ;;  %v1437_v35 = vmul.f32 %v2041_v22, %v1301_v30 }
 0x2a2   : > { %v1441_v25 = vmul.f32 %v2042_v36, %v1305_v32  ;;  %v1445_v24 = vmul.f32 %v1309_v42, %v2604_v45  ;;  %v1449_v10 = vmul.f32 %v1313_v43, %v2607_v46  ;;  %v1453_v9 = vadd.f32 %v1421_v59, %v2624_v56 }
 0x2a3   : > { %v1457_v37 = vadd.f32 %v1425_v60, %v2627_v58  ;;  %v1461_v5 = vadd.f32 %v1429_v14, %v3345_v39  ;;  %v1465_v48 = vadd.f32 %v1433_v18, %v3346_v41  ;;  %v1469_v55 = vadd.f32 %v1437_v35, %v3347_v54  ;;  %v3354_v60 = vld [vmem:[#allocation34_spill] sm:$0xff] }
 0x2a4   : > { %v1473_v4 = vadd.f32 %v1441_v25, %v3348_v3  ;;  %v1477_v45 = vadd.f32 %v1445_v24, %v3349_v12  ;;  %v1481_v46 = vadd.f32 %v1449_v10, %v3350_v38  ;;  %1485 = vst [vmem:[%s2903_s24 + $0x10] sm:$0xff] %v1453_v9  ;;  %v1517_v21 = vmul.f32 %v1389_v26, %v2624_v56 }
 0x2a5   : > { %1489 = vst [vmem:[%s2903_s24 + $0x30] sm:$0xff] %v1457_v37  ;;  %1493 = vst [vmem:[%s2903_s24 + $0x50] sm:$0xff] %v1461_v5  ;;  %v1521_v23 = vmul.f32 %v1393_v27, %v2627_v58  ;;  %v1525_v6 = vmul.f32 %v1397_v31, %v3345_v39  ;;  %v1529_v7 = vmul.f32 %v1401_v34, %v3346_v41  ;;  %v2043_v31 = vld [vmem:[%s2541_s19 + $0xd0] sm:$0xff] }
 0x2a6   : > { %1497 = vst [vmem:[%s2903_s24 + $0x70] sm:$0xff] %v1465_v48  ;;  %1501 = vst [vmem:[%s2903_s24 + $0x90] sm:$0xff] %v1469_v55  ;;  %v1533_v19 = vmul.f32 %v1405_v13, %v3347_v54  ;;  %v1537_v20 = vmul.f32 %v1409_v62, %v3348_v3  ;;  %v1541_v56 = vmul.f32 %v1413_v47, %v3349_v12  ;;  %v2044_v13 = vld [vmem:[%s2541_s19 + $0xf0] sm:$0xff]  ;;  %v3351_v62 = vld [vmem:[#allocation31_spill] sm:$0xff] }
 0x2a7   : > { %1505 = vst [vmem:[%s2903_s24 + $0xb0] sm:$0xff] %v1473_v4  ;;  %1509 = vst [vmem:[%s2903_s24 + $0xd0] sm:$0xff] %v1477_v45  ;;  %v1545_v58 = vmul.f32 %v1417_v51, %v3350_v38  ;;  %v1549_v30 = vadd.f32 %v2037_v57, %v1517_v21  ;;  %v1553_v32 = vadd.f32 %v2038_v50, %v1521_v23  ;;  %v3352_v47 = vld [vmem:[#allocation33_spill] sm:$0xff]  ;;  %v3353_v57 = vld [vmem:[#allocation32_spill] sm:$0xff] }
 0x2a8   : > { %1513 = vst [vmem:[%s2903_s24 + $0xf0] sm:$0xff] %v1481_v46  ;;  %v1557_v42 = vadd.f32 %v2039_v61, %v1525_v6  ;;  %v1561_v43 = vadd.f32 %v2040_v15, %v1529_v7  ;;  %v1565_v26 = vadd.f32 %v2041_v22, %v1533_v19  ;;  %v1569_v27 = vadd.f32 %v2042_v36, %v1537_v20  ;;  %v2045_v3 = vld [vmem:[%s2541_s19 + $0x8] sm:$0xff] }
 0x2a9   : > { %v1573_v34 = vadd.f32 %v2043_v31, %v1541_v56  ;;  %v1577_v59 = vadd.f32 %v2044_v13, %v1545_v58  ;;  %1581 = vst [vmem:[%s2930_s22 + $0x10] sm:$0xff] %v1549_v30  ;;  %1585 = vst [vmem:[%s2930_s22 + $0x30] sm:$0xff] %v1553_v32  ;;  %v1274_v51 = vrot.slane %v3352_v47, %v3351_v62  ;;  %v2046_v12 = vld [vmem:[%s2541_s19 + $0x28] sm:$0xff] }
 0x2aa   : > { %1589 = vst [vmem:[%s2930_s22 + $0x50] sm:$0xff] %v1557_v42  ;;  %1593 = vst [vmem:[%s2930_s22 + $0x70] sm:$0xff] %v1561_v43  ;;  %v1378_v50 = vrot.slane %v3352_v47, %v3353_v57  ;;  %v3020_v61 = vrot.slane %v3354_v60, %v3351_v62  ;;  %v3024_v14 = vrot.slane %v3354_v60, %v3353_v57  ;;  %v2047_v38 = vld [vmem:[%s2541_s19 + $0x48] sm:$0xff] }
 0x2ab   : > { %1597 = vst [vmem:[%s2930_s22 + $0x90] sm:$0xff] %v1565_v26  ;;  %1601 = vst [vmem:[%s2930_s22 + $0xb0] sm:$0xff] %v1569_v27  ;;  %v1284_v15 = vadd.f32 %v1274_v51, %v2822_v28  ;;  %v1288_v18 = vadd.f32 %v1274_v51, %v2824_v29  ;;  %v1292_v22 = vadd.f32 %v1274_v51, %v2826_v33  ;;  %v2048_v21 = vld [vmem:[%s2541_s19 + $0x68] sm:$0xff] }
 0x2ac   : > { %1605 = vst [vmem:[%s2930_s22 + $0xd0] sm:$0xff] %v1573_v34  ;;  %1609 = vst [vmem:[%s2930_s22 + $0xf0] sm:$0xff] %v1577_v59  ;;  %v1296_v35 = vadd.f32 %v1274_v51, %v2828_v0  ;;  %v1300_v36 = vadd.f32 %v1274_v51, %v2832_v8  ;;  %v1304_v25 = vadd.f32 %v1274_v51, %v2830_v2  ;;  %v2049_v6 = vld [vmem:[%s2541_s19 + $0x88] sm:$0xff] }
 0x2ad   : > { %v1308_v24 = vadd.f32 %v1274_v51, %v2836_v11  ;;  %v1312_v10 = vadd.f32 %v1274_v51, %v2834_v1  ;;  %v1388_v9 = vadd.f32 %v1378_v50, %v2840_v17  ;;  %v1392_v37 = vadd.f32 %v1378_v50, %v2838_v16  ;;  %v2050_v19 = vld [vmem:[%s2541_s19 + $0xa8] sm:$0xff] }
 0x2ae   : > { %v1396_v39 = vadd.f32 %v1378_v50, %v2844_v44  ;;  %v1400_v5 = vadd.f32 %v1378_v50, %v2842_v63  ;;  %v1404_v41 = vadd.f32 %v1378_v50, %v2852_v53  ;;  %v1408_v48 = vadd.f32 %v1378_v50, %v2850_v52  ;;  %v2051_v56 = vld [vmem:[%s2541_s19 + $0xc8] sm:$0xff] }
 0x2af   : > { %v1412_v54 = vadd.f32 %v1378_v50, %v2876_v40  ;;  %v1416_v55 = vadd.f32 %v1378_v50, %v2874_v49  ;;  %v1420_v4 = vmul.f32 %v2045_v3, %v1284_v15  ;;  %v1424_v45 = vmul.f32 %v2046_v12, %v1288_v18  ;;  %v2052_v30 = vld [vmem:[%s2541_s19 + $0xe8] sm:$0xff]  ;;  %v3355_v50 = vld [vmem:[#allocation27_spill] sm:$0xff] }
 0x2b0   : > { %v1428_v46 = vmul.f32 %v2047_v38, %v1292_v22  ;;  %v1432_v23 = vmul.f32 %v2048_v21, %v1296_v35  ;;  %v1436_v7 = vmul.f32 %v2049_v6, %v1300_v36  ;;  %v1440_v20 = vmul.f32 %v2050_v19, %v1304_v25  ;;  %v2053_v42 = vld [vmem:[%s2533_s23 + $0x8] sm:$0xff] }
 0x2b1   : > { %v1444_v58 = vmul.f32 %v2051_v56, %v1308_v24  ;;  %v1448_v32 = vmul.f32 %v2052_v30, %v1312_v10  ;;  %v1452_v43 = vadd.f32 %v2053_v42, %v1420_v4  ;;  %v2054_v26 = vld [vmem:[%s2533_s23 + $0x28] sm:$0xff]  ;;  %v1516_v22 = vmul.f32 %v2053_v42, %v1388_v9  ;;  %v3131_v42 = vld [vmem:[%s2541_s19 + $0xf8] sm:$0xff] }
 0x2b2   : > { %v1456_v27 = vadd.f32 %v2054_v26, %v1424_v45  ;;  %v2055_v31 = vld [vmem:[%s2533_s23 + $0x48] sm:$0xff]  ;;  %v1520_v35 = vmul.f32 %v2054_v26, %v1392_v37  ;;  %v2069_v26 = vld [vmem:[%s2533_s23 + $0x18] sm:$0xff] }
 0x2b3   : > { %v1460_v34 = vadd.f32 %v2055_v31, %v1428_v46  ;;  %v2056_v13 = vld [vmem:[%s2533_s23 + $0x68] sm:$0xff]  ;;  %v1476_v60 = vadd.f32 %v1444_v58, %v3355_v50  ;;  %1484 = vst [vmem:[%s2903_s24 + $0x8] sm:$0xff] %v1452_v43  ;;  %v1524_v36 = vmul.f32 %v2055_v31, %v1396_v39  ;;  %v1548_v9 = vadd.f32 %v2045_v3, %v1516_v22  ;;  %v2070_v31 = vld [vmem:[%s2533_s23 + $0x38] sm:$0xff] }
 0x2b4   : > { %v1464_v59 = vadd.f32 %v2056_v13, %v1432_v23  ;;  %v2057_v62 = vld [vmem:[%s2533_s23 + $0x88] sm:$0xff]  ;;  %1488 = vst [vmem:[%s2903_s24 + $0x28] sm:$0xff] %v1456_v27  ;;  %v1528_v25 = vmul.f32 %v2056_v13, %v1400_v5  ;;  %v1552_v37 = vadd.f32 %v2046_v12, %v1520_v35  ;;  %v1298_v3 = vadd.f32 %v3020_v61, %v2828_v0  ;;  %v2071_v13 = vld [vmem:[%s2533_s23 + $0x58] sm:$0xff] }
 0x2b5   : > { %v1468_v47 = vadd.f32 %v2057_v62, %v1436_v7  ;;  %v2058_v51 = vld [vmem:[%s2533_s23 + $0xa8] sm:$0xff]  ;;  %1492 = vst [vmem:[%s2903_s24 + $0x48] sm:$0xff] %v1460_v34  ;;  %1508 = vst [vmem:[%s2903_s24 + $0xc8] sm:$0xff] %v1476_v60  ;;  %v1532_v24 = vmul.f32 %v2057_v62, %v1404_v41  ;;  %v1556_v39 = vadd.f32 %v2047_v38, %v1524_v36  ;;  %v2072_v62 = vld [vmem:[%s2533_s23 + $0x78] sm:$0xff] }
 0x2b6   : > { %v1472_v57 = vadd.f32 %v2058_v51, %v1440_v20  ;;  %v3356_v15 = vld [vmem:[#allocation28_spill] sm:$0xff]  ;;  %1496 = vst [vmem:[%s2903_s24 + $0x68] sm:$0xff] %v1464_v59  ;;  %v1536_v10 = vmul.f32 %v2058_v51, %v1408_v48  ;;  %v1560_v5 = vadd.f32 %v2048_v21, %v1528_v25  ;;  %1580 = vst [vmem:[%s2930_s22 + $0x8] sm:$0xff] %v1548_v9  ;;  %v2073_v51 = vld [vmem:[%s2533_s23 + $0x98] sm:$0xff] }
 0x2b7   : > { %v1480_v18 = vadd.f32 %v1448_v32, %v3356_v15  ;;  %1500 = vst [vmem:[%s2903_s24 + $0x88] sm:$0xff] %v1468_v47  ;;  %v2059_v4 = vld [vmem:[%s2533_s23 + $0xc8] sm:$0xff]  ;;  %v1564_v7 = vadd.f32 %v2049_v6, %v1532_v24  ;;  %1584 = vst [vmem:[%s2930_s22 + $0x28] sm:$0xff] %v1552_v37  ;;  %v1286_v48 = vadd.f32 %v3020_v61, %v2822_v28  ;;  %v2074_v50 = vld [vmem:[%s2533_s23 + $0xb8] sm:$0xff] }
 0x2b8   : > { %1504 = vst [vmem:[%s2903_s24 + $0xa8] sm:$0xff] %v1472_v57  ;;  %v1540_v45 = vmul.f32 %v2059_v4, %v1412_v54  ;;  %v2060_v46 = vld [vmem:[%s2533_s23 + $0xe8] sm:$0xff]  ;;  %v1568_v20 = vadd.f32 %v2050_v19, %v1536_v10  ;;  %1588 = vst [vmem:[%s2930_s22 + $0x48] sm:$0xff] %v1556_v39  ;;  %v1290_v54 = vadd.f32 %v3020_v61, %v2824_v29  ;;  %v2075_v15 = vld [vmem:[%s2533_s23 + $0xd8] sm:$0xff] }
 0x2b9   : > { %1512 = vst [vmem:[%s2903_s24 + $0xe8] sm:$0xff] %v1480_v18  ;;  %v1544_v23 = vmul.f32 %v2060_v46, %v1416_v55  ;;  %1592 = vst [vmem:[%s2930_s22 + $0x68] sm:$0xff] %v1560_v5  ;;  %v1294_v55 = vadd.f32 %v3020_v61, %v2826_v33  ;;  %v1302_v12 = vadd.f32 %v3020_v61, %v2832_v8  ;;  %v2076_v22 = vld [vmem:[%s2533_s23 + $0xf8] sm:$0xff]  ;;  %s1612_s23 = scalar_lea.sflag [#allocation4], %s2526_s26 }
 0x2ba   : > { %v1572_v58 = vadd.f32 %v2051_v56, %v1540_v45  ;;  %1596 = vst [vmem:[%s2930_s22 + $0x88] sm:$0xff] %v1564_v7  ;;  %1600 = vst [vmem:[%s2930_s22 + $0xa8] sm:$0xff] %v1568_v20  ;;  %v1306_v28 = vadd.f32 %v3020_v61, %v2830_v2  ;;  %v1310_v29 = vadd.f32 %v3020_v61, %v2836_v11  ;;  %v3119_v56 = vld [vmem:[%s2541_s19 + $0x98] sm:$0xff] }
 0x2bb   : > { %v1576_v41 = vadd.f32 %v2052_v30, %v1544_v23  ;;  %v1314_v33 = vadd.f32 %v3020_v61, %v2834_v1  ;;  %v1390_v0 = vadd.f32 %v3024_v14, %v2840_v17  ;;  %v1394_v38 = vadd.f32 %v3024_v14, %v2838_v16  ;;  %v2062_v61 = vld [vmem:[%s2541_s19 + $0x38] sm:$0xff] }
 0x2bc   : > { %1604 = vst [vmem:[%s2930_s22 + $0xc8] sm:$0xff] %v1572_v58  ;;  %v1398_v8 = vadd.f32 %v3024_v14, %v2844_v44  ;;  %v1402_v2 = vadd.f32 %v3024_v14, %v2842_v63  ;;  %v1406_v11 = vadd.f32 %v3024_v14, %v2852_v53  ;;  %v1410_v1 = vadd.f32 %v3024_v14, %v2850_v52  ;;  %v2061_v44 = vld [vmem:[%s2541_s19 + $0x18] sm:$0xff] }
 0x2bd   : > { %1608 = vst [vmem:[%s2930_s22 + $0xe8] sm:$0xff] %v1576_v41  ;;  %v1414_v17 = vadd.f32 %v3024_v14, %v2876_v40  ;;  %v1418_v16 = vadd.f32 %v3024_v14, %v2874_v49  ;;  %v1422_v63 = vmul.f32 %v2061_v44, %v1286_v48  ;;  %v1426_v21 = vmul.f32 %v2062_v61, %v1290_v54  ;;  %v2063_v53 = vld [vmem:[%s2541_s19 + $0x58] sm:$0xff] }
 0x2be   : > { %v1430_v6 = vmul.f32 %v2063_v53, %v1294_v55  ;;  %v2064_v52 = vld [vmem:[%s2541_s19 + $0x78] sm:$0xff]  ;;  %v1438_v40 = vmul.f32 %v3119_v56, %v1302_v12  ;;  %v1450_v43 = vmul.f32 %v3131_v42, %v1314_v33  ;;  %v1518_v36 = vmul.f32 %v2069_v26, %v1390_v0 }
 0x2bf   : > { %v1434_v19 = vmul.f32 %v2064_v52, %v1298_v3  ;;  %v3123_v49 = vld [vmem:[%s2541_s19 + $0xb8] sm:$0xff]  ;;  %v1454_v27 = vadd.f32 %v2069_v26, %v1422_v63  ;;  %v1458_v34 = vadd.f32 %v2070_v31, %v1426_v21  ;;  %v1522_v25 = vmul.f32 %v2070_v31, %v1394_v38 }
 0x2c0   : > { %v1442_v14 = vmul.f32 %v3123_v49, %v1306_v28  ;;  %v3127_v30 = vld [vmem:[%s2541_s19 + $0xd8] sm:$0xff]  ;;  %v1462_v59 = vadd.f32 %v2071_v13, %v1430_v6  ;;  %v1470_v57 = vadd.f32 %v2073_v51, %v1438_v40  ;;  %v1482_v35 = vadd.f32 %v2076_v22, %v1450_v43  ;;  %s1650_s19 = sshll.u32 %s2930_s22, 4  ;;  %s3200_s19 = int_to_ptr.vmem [resolvable:$true] %s1650_s19 }
 0x2c1   : > { %v1446_v32 = vmul.f32 %v3127_v30, %v1310_v29  ;;  %v1466_v47 = vadd.f32 %v2072_v62, %v1434_v19  ;;  %1486 = vst [vmem:[%s2903_s24 + $0x18] sm:$0xff] %v1454_v27  ;;  %1490 = vst [vmem:[%s2903_s24 + $0x38] sm:$0xff] %v1458_v34  ;;  %v1526_v24 = vmul.f32 %v2071_v13, %v1398_v8 }
 0x2c2   : > { %v1474_v60 = vadd.f32 %v2074_v50, %v1442_v14  ;;  %1494 = vst [vmem:[%s2903_s24 + $0x58] sm:$0xff] %v1462_v59  ;;  %v1530_v10 = vmul.f32 %v2072_v62, %v1402_v2  ;;  %1502 = vst [vmem:[%s2903_s24 + $0x98] sm:$0xff] %v1470_v57  ;;  %v1534_v4 = vmul.f32 %v2073_v51, %v1406_v11 }
 0x2c3   : > { %v1478_v18 = vadd.f32 %v2075_v15, %v1446_v32  ;;  %1498 = vst [vmem:[%s2903_s24 + $0x78] sm:$0xff] %v1466_v47  ;;  %1514 = vst [vmem:[%s2903_s24 + $0xf8] sm:$0xff] %v1482_v35  ;;  %v1538_v45 = vmul.f32 %v2074_v50, %v1410_v1  ;;  %v1542_v46 = vmul.f32 %v2075_v15, %v1414_v17 }
 0x2c4   : > { %1506 = vst [vmem:[%s2903_s24 + $0xb8] sm:$0xff] %v1474_v60  ;;  %v1546_v23 = vmul.f32 %v2076_v22, %v1418_v16  ;;  %v1550_v9 = vadd.f32 %v2061_v44, %v1518_v36  ;;  %v1554_v37 = vadd.f32 %v2062_v61, %v1522_v25  ;;  %v1558_v39 = vadd.f32 %v2063_v53, %v1526_v24 }
 0x2c5   : > { %1510 = vst [vmem:[%s2903_s24 + $0xd8] sm:$0xff] %v1478_v18  ;;  %v1562_v5 = vadd.f32 %v2064_v52, %v1530_v10 }
 0x2c6   : > { %2150 = shalt.err (!%p2147_p5)
}
 0x2c7   : > { %s2151_s29 = scalar_lea.hbm %s3139_s30, 4096  ;;  %s2155_s27 = scalar_lea.hbm %s3274_s9, 16384 }
 0x2c8   : > { %p2152_p11 = scmp.ne.s32.totalorder %s3139_s30, %s2151_s29  ;;  %p2156_p6 = scmp.lt.u32.totalorder %s3139_s30, %s3274_s9 }
 0x2c9   : > { %p2157_p8 = scmp.lt.u32.totalorder %s2155_s27, %s2151_s29  ;;  %p2159_p3 = scmp.lt.u32.totalorder %s2151_s29, %s3139_s30 }
 0x2ca   : > { %p2153_p2 = pnand %p2152_p11, %p3358_p1 }
 0x2cb   : > { %p2158_p0 = por %p2157_p8, %p2156_p6 }
 0x2cc   : > { %p2154_p4 = pneg %p2153_p2 }
 0x2cd   : > { %p2160_p13 = por %p2159_p3, %p2158_p0 }
 0x2cf   : > { %p2161_p7 = pnand %p2160_p13, %p2154_p4 }
 0x2d1   : > { %2164 = shalt.err (!%p2161_p7)
}
 0x2d2   : > { %s2280_s18 = smov 512   ;;  %s2281_s28 = smov 1024   ;;  %v1566_v7 = vadd.f32 %v3119_v56, %v1534_v4  ;;  %v1570_v20 = vadd.f32 %v3123_v49, %v1538_v45  ;;  %v1574_v58 = vadd.f32 %v3127_v30, %v1542_v46  ;;  %v1578_v41 = vadd.f32 %v3131_v42, %v1546_v23  ;;  %1582 = vst [vmem:[%s2930_s22 + $0x18] sm:$0xff] %v1550_v9 }
 0x2d3   : > { %s2282_s25 = smov 32   ;;  %s3359_s29 = sld [smem:[#allocation36_spill]]  ;;  %1586 = vst [vmem:[%s2930_s22 + $0x38] sm:$0xff] %v1554_v37  ;;  %1590 = vst [vmem:[%s2930_s22 + $0x58] sm:$0xff] %v1558_v39 }
 0x2d4   : > { %1920 = dma.vmem_to_hbm [thread:$0]  (%p3358_p1), %s3145_s11, 4096, %s3139_s30, %s1612_s23, %s2280_s18, %s2281_s28, %s2282_s25  }
 0x2d5   : > { %1594 = vst [vmem:[%s2930_s22 + $0x78] sm:$0xff] %v1562_v5  ;;  %1598 = vst [vmem:[%s2930_s22 + $0x98] sm:$0xff] %v1566_v7  ;;  %s1617_s16 = scalar_lea.sflag [#allocation9], %s2526_s26  ;;  %s2165_s11 = scalar_lea.vmem %s3200_s19, 4096 }
 0x2d6   : > { %1602 = vst [vmem:[%s2930_s22 + $0xb8] sm:$0xff] %v1570_v20  ;;  %1606 = vst [vmem:[%s2930_s22 + $0xd8] sm:$0xff] %v1574_v58  ;;  %p2166_p10 = scmp.ne.s32.totalorder %s3200_s19, %s2165_s11 }
 0x2d7   : > { %1610 = vst [vmem:[%s2930_s22 + $0xf8] sm:$0xff] %v1578_v41 }
 0x2d8   : > { %p2167_p9 = pnand %p2166_p10, %p3358_p1 }
 0x2d9   : > { %s3196_s21 = scalar_lea.hbm %s3359_s29, %s1876_s17  ;;  %s2283_s17 = smov [#allocation8]  }
 0x2da   : > { %p2168_p12 = pneg %p2167_p9  ;;  %s2169_s30 = sshll.u32 %s2283_s17, 4  ;;  %s2170_s30 = int_to_ptr.vmem [resolvable:$false] %s2169_s30 }
 0x2db   : > { %s2171_s23 = scalar_lea.vmem %s2170_s30, 8192  ;;  %p2172_p5 = scmp.lt.s32.totalorder %s3200_s19, %s2170_s30 }
 0x2dc   : > { %p2173_p11 = scmp.lt.s32.totalorder %s2171_s23, %s2165_s11 }
 0x2de   : > { %p2174_p2 = por %p2173_p11, %p2172_p5 }
 0x2e0   : > { %p2175_p4 = pnand %p2174_p2, %p2168_p12 }
 0x2e2   : > { %2178 = shalt.err (!%p2175_p4)
}
 0x2e3   : > { %s2179_s22 = scalar_lea.hbm %s3196_s21, 4096  ;;  %s2183_s13 = scalar_lea.hbm %s3359_s29, 16384 }
 0x2e4   : > { %p2180_p6 = scmp.ne.s32.totalorder %s3196_s21, %s2179_s22  ;;  %p2184_p3 = scmp.lt.u32.totalorder %s3196_s21, %s3359_s29 }
 0x2e5   : > { %p2185_p13 = scmp.lt.u32.totalorder %s2183_s13, %s2179_s22  ;;  %p2187_p10 = scmp.lt.u32.totalorder %s2179_s22, %s3196_s21 }
 0x2e6   : > { %p2181_p8 = pnand %p2180_p6, %p3358_p1 }
 0x2e7   : > { %p2186_p7 = por %p2185_p13, %p2184_p3 }
 0x2e8   : > { %p2182_p0 = pneg %p2181_p8 }
 0x2e9   : > { %p2188_p9 = por %p2187_p10, %p2186_p7 }
 0x2eb   : > { %p2189_p12 = pnand %p2188_p9, %p2182_p0 }
 0x2ed   : > { %2192 = shalt.err (!%p2189_p12)
}
 0x2ee   : > { %1921 = dma.vmem_to_hbm [thread:$0]  (%p3358_p1), %s3200_s19, 4096, %s3196_s21, %s1617_s16, %s2280_s18, %s2281_s28, %s2282_s25  }
 0x2ef PF: > { %s3360_s0 = sld [smem:[#allocation14_spill]]  ;;  %s3361_s11 = sld [smem:[#allocation21_spill]] }
 0x2f0   : > { %p1939_p5 = scmp.ge.s32.totalorder %s2271_s20, 2 }
 0x2f5   : > { %s1665_s17 = sand.u32 1, %s3360_s0   ;;  %p3362_p11 = scmp.ne.s32.totalorder %s3361_s11, 0 }
 0x2f6   : > { %s1666_s30 = scalar_lea.sflag [#allocation4], %s1665_s17 }
 0x2f7   : > { %p1932_p2 = pnand %p1939_p5, %p3362_p11 }
 0x2f9   : > { %2234 = dma.done.wait (!%p1932_p2), %s1666_s30, 4096  }
 0x2fa   : > { %2236 = vsyncadd (!%p1932_p2), %s1666_s30, 4294963200  ;;  %s1675_s10 = scalar_lea.sflag [#allocation9], %s1665_s17 }
 0x2fb   : > { %2238 = dma.done.wait (!%p1932_p2), %s1675_s10, 4096  }
 0x2fc   : > { %2240 = vsyncadd (!%p1932_p2), %s1675_s10, 4294963200  ;;  %s33_s20 = sadd.s32 1, %s2271_s20   ;;  %s3363_s26 = sld [smem:[#allocation15_spill]] }
 0x2fd   : > { %p30_p4 = scmp.ge.s32.totalorder %s33_s20, 6   ;;  %s3364_s15 = sld [smem:[#allocation22_spill]] }
 0x2fe   : > { %s3365_s16 = sld [smem:[#allocation16_spill]]  ;;  %s3366_s17 = sld [smem:[#allocation17_spill]] }
 0x2ff   : > { %s3367_s18 = sld [smem:[#allocation18_spill]]  ;;  %s3368_s19 = sld [smem:[#allocation19_spill]] }
 0x300   : > { %s3369_s13 = smov %s2247_s14  ;;  %32 = sbr.rel (!%p30_p4) target bundleno = 14 (0xe), region = 137 }
 0x302   : > { %s3370_s14 = smov %s3363_s26 }
 0x307   :  { %1680 = vsyncpa [#allocation3], 1 }
 0x308   :  { %1682 = vsyncpa [#allocation3 + $0x1], 1 }
 0x309   :  { %1683 = vsyncpa [#allocation6], 1 }
 0x30a   :  { %1685 = vsyncpa [#allocation6 + $0x1], 1 }
 0x30b   :  { %1686 = vsyncpa [#allocation4], 1 }
 0x30c   :  { %1688 = vsyncpa [#allocation4 + $0x1], 1 }
 0x30d   :  { %1689 = vsyncpa [#allocation9], 1 }
 0x30e   :  { %1691 = vsyncpa [#allocation9 + $0x1], 1 }

</bundles_post_ra>
